<compile_context>
chip_gen: v7x
topology: tpu7x:2x2x1
jax: 0.10.0
libtpu: 0.0.40
codegen_flags: <defaults>
</compile_context>

<pallas_src>
import functools

import jax
import jax.numpy as jnp
from jax.experimental import pallas as pl
from jax.experimental.pallas import tpu as pltpu


# ----------------------------------------------------------------------------
# Fused 5-layer kernel: h = x; for each layer: h = relu?(h @ W + b)
# refs = (x_ref, w1, b1, w2, b2, ..., w5, b5, o_ref)
# ----------------------------------------------------------------------------
def _fcnet_kernel(*refs, compute_dtype):
    x_ref = refs[0]
    o_ref = refs[-1]
    wb_refs = refs[1:-1]
    n_layers = len(wb_refs) // 2

    h = x_ref[...]                      # (tm, 1024) in compute_dtype (bf16)
    for l in range(n_layers):
        w = wb_refs[2 * l][...]          # (K_l, N_l) compute_dtype
        b = wb_refs[2 * l + 1][...]      # (1, N_l)   f32
        acc = jnp.dot(h, w, preferred_element_type=jnp.float32) + b
        if l < n_layers - 1:
            h = jnp.maximum(acc, 0.0).astype(compute_dtype)   # ReLU, back to bf16
        else:
            h = acc                                            # final layer: no ReLU
    o_ref[...] = h.astype(o_ref.dtype)


# ----------------------------------------------------------------------------
# One-time parameter preparation (hoisted out of the forward pass):
#   PyTorch W is (out, in) -> store W^T (in, out) in bf16; bias as (1, N) f32.
# ----------------------------------------------------------------------------
def prepare_params(params, compute_dtype=jnp.bfloat16):
    prepared = []
    for w, b in params:
        prepared.append((jnp.transpose(w).astype(compute_dtype),
                         b.reshape(1, -1).astype(jnp.float32)))
    return prepared


# ----------------------------------------------------------------------------
# Fused forward: one pallas_call, grid over M stripes only.
# ----------------------------------------------------------------------------
def fcnet_forward(x, prepared, compute_dtype=jnp.bfloat16,
                  out_dtype=jnp.float32):
    """x: any shape reshapable to (-1, 1024); prepared: output of prepare_params."""
    in_features = prepared[0][0].shape[0]            # 1024
    n_out = prepared[-1][0].shape[1]                 # 10
    h = x.reshape(-1, in_features).astype(compute_dtype)
    M = h.shape[0]

    # Batch stripe: 128 for large batches (multiple of 16 -> bf16 sublane
    # packing, and >=2 blocks enables megacore sharding on v7x); for small
    # batches pad M up to a multiple of 8 and use a single stripe.
    if M >= 128:
        tm = 128
    else:
        tm = max(8, ((M + 7) // 8) * 8)
    M_pad = ((M + tm - 1) // tm) * tm
    if M_pad != M:
        h = jnp.pad(h, ((0, M_pad - M), (0, 0)))
    grid = (M_pad // tm,)

    # BlockSpecs: x/out tiled over M; all weights & biases fully VMEM-resident.
    in_specs = [pl.BlockSpec((tm, in_features), lambda i: (i, 0))]
    flat_args = [h]
    for w_t, b2 in prepared:
        k_l, n_l = w_t.shape
        in_specs.append(pl.BlockSpec((k_l, n_l), lambda i: (0, 0)))
        in_specs.append(pl.BlockSpec((1, n_l), lambda i: (0, 0)))
        flat_args.append(w_t)
        flat_args.append(b2)

    out = pl.pallas_call(
        functools.partial(_fcnet_kernel, compute_dtype=compute_dtype),
        out_shape=jax.ShapeDtypeStruct((M_pad, n_out), out_dtype),
        grid_spec=pltpu.PrefetchScalarGridSpec(
            num_scalar_prefetch=0,
            grid=grid,
            in_specs=in_specs,
            out_specs=pl.BlockSpec((tm, n_out), lambda i: (i, 0)),
        ),
        compiler_params=pltpu.CompilerParams(
            dimension_semantics=("parallel",)),
    )(*flat_args)

    return out[:M] if M_pad != M else out


# ----------------------------------------------------------------------------
# Pure-JAX reference mirroring the same bf16-matmul / f32-accumulate math.
# ----------------------------------------------------------------------------
def fcnet_reference(x, params, compute_dtype=jnp.bfloat16):
    h = x.reshape(-1, 1024).astype(compute_dtype)
    for w, b in params[:-1]:
        acc = jnp.dot(h, jnp.transpose(w).astype(compute_dtype),
                      preferred_element_type=jnp.float32) + b.astype(jnp.float32)
        h = jnp.maximum(acc, 0.0).astype(compute_dtype)
    w, b = params[-1]
    return jnp.dot(h, jnp.transpose(w).astype(compute_dtype),
                   preferred_element_type=jnp.float32) + b.astype(jnp.float32)


# ----------------------------------------------------------------------------
# Deterministic parameter init (PyTorch nn.Linear convention: W is (out, in))
# ----------------------------------------------------------------------------
def make_params(key):
    sizes = [(1024, 512), (512, 256), (256, 128), (128, 64), (64, 10)]
    params = []
    for fan_in, fan_out in sizes:
        kw, kb, key = jax.random.split(key, 3)
        bound = 1.0 / (fan_in ** 0.5)
        w = jax.random.uniform(kw, (fan_out, fan_in), jnp.float32, -bound, bound)
        b = jax.random.uniform(kb, (fan_out,), jnp.float32, -bound, bound)
        params.append((w, b))
    return params


if __name__ == "__main__":
    key = jax.random.PRNGKey(0)
    kx, kp = jax.random.split(key)

    # Small MNIST-like batch: (8, 1, 32, 32) reshapes to (8, 1024) in forward.
    x = jax.random.normal(kx, (8, 1, 32, 32), jnp.float32)
    params = make_params(kp)

    # Hoisted, one-time parameter preparation (transpose / cast / bias reshape).
    prepared = prepare_params(params)

    fwd = jax.jit(fcnet_forward)
    out = jax.block_until_ready(fwd(x, prepared))
    ref = jax.block_until_ready(fcnet_reference(x, params))

    assert out.shape == ref.shape == (8, 10), (out.shape, ref.shape)
    max_err = jnp.max(jnp.abs(out - ref))
    assert jnp.allclose(out, ref, atol=1e-2, rtol=1e-2), f"max err {max_err}"

    print("KERNEL_OK")
</pallas_src>

<mosaic_0001>
module attributes {stable_mosaic.version = 11 : i64} {
  func.func @_fcnet_kernel(%arg0: i32, %arg1: memref<8x1024xbf16, #tpu.memory_space<vmem>>, %arg2: memref<1024x512xbf16, #tpu.memory_space<vmem>>, %arg3: memref<1x512xf32, #tpu.memory_space<vmem>>, %arg4: memref<512x256xbf16, #tpu.memory_space<vmem>>, %arg5: memref<1x256xf32, #tpu.memory_space<vmem>>, %arg6: memref<256x128xbf16, #tpu.memory_space<vmem>>, %arg7: memref<1x128xf32, #tpu.memory_space<vmem>>, %arg8: memref<128x64xbf16, #tpu.memory_space<vmem>>, %arg9: memref<1x64xf32, #tpu.memory_space<vmem>>, %arg10: memref<64x10xbf16, #tpu.memory_space<vmem>>, %arg11: memref<1x10xf32, #tpu.memory_space<vmem>>, %arg12: memref<8x10xf32, #tpu.memory_space<vmem>>) attributes {dimension_semantics = [#tpu.dimension_semantics<parallel>], iteration_bounds = array<i64: 1>, scalar_prefetch = 0 : i64, scratch_operands = 0 : i64, tpu.core_type = #tpu.core_type<tc>, window_params = [{transform_indices = @transform_0, window_bounds = array<i64: 8, 1024>}, {pipeline_mode = #tpu.pipeline_mode<synchronous>, transform_indices = @transform_1, window_bounds = array<i64: 1024, 512>}, {pipeline_mode = #tpu.pipeline_mode<synchronous>, transform_indices = @transform_2, window_bounds = array<i64: 1, 512>}, {pipeline_mode = #tpu.pipeline_mode<synchronous>, transform_indices = @transform_3, window_bounds = array<i64: 512, 256>}, {pipeline_mode = #tpu.pipeline_mode<synchronous>, transform_indices = @transform_4, window_bounds = array<i64: 1, 256>}, {pipeline_mode = #tpu.pipeline_mode<synchronous>, transform_indices = @transform_5, window_bounds = array<i64: 256, 128>}, {pipeline_mode = #tpu.pipeline_mode<synchronous>, transform_indices = @transform_6, window_bounds = array<i64: 1, 128>}, {pipeline_mode = #tpu.pipeline_mode<synchronous>, transform_indices = @transform_7, window_bounds = array<i64: 128, 64>}, {pipeline_mode = #tpu.pipeline_mode<synchronous>, transform_indices = @transform_8, window_bounds = array<i64: 1, 64>}, {pipeline_mode = #tpu.pipeline_mode<synchronous>, transform_indices = @transform_9, window_bounds = array<i64: 64, 10>}, {pipeline_mode = #tpu.pipeline_mode<synchronous>, transform_indices = @transform_10, window_bounds = array<i64: 1, 10>}, {transform_indices = @transform_11, window_bounds = array<i64: 8, 10>}]} {
    %c0 = arith.constant 0 : index
    %c0_0 = arith.constant 0 : index
    %0 = vector.load %arg1[%c0, %c0_0] : memref<8x1024xbf16, #tpu.memory_space<vmem>>, vector<8x1024xbf16>
    %c0_1 = arith.constant 0 : index
    %c0_2 = arith.constant 0 : index
    %1 = vector.load %arg2[%c0_1, %c0_2] : memref<1024x512xbf16, #tpu.memory_space<vmem>>, vector<1024x512xbf16>
    %c0_3 = arith.constant 0 : index
    %c0_4 = arith.constant 0 : index
    %2 = vector.load %arg3[%c0_3, %c0_4] : memref<1x512xf32, #tpu.memory_space<vmem>>, vector<1x512xf32>
    %cst = arith.constant dense<0.000000e+00> : vector<8x512xf32>
    %3 = tpu.matmul %0, %1, %cst {dimension_numbers = #tpu.dot_dimension_numbers<[1], [0], [0], [1], [0, 0, 1, 1], [], []>} : vector<8x1024xbf16>, vector<1024x512xbf16>, vector<8x512xf32> -> vector<8x512xf32>
    %4 = vector.broadcast %2 : vector<1x512xf32> to vector<8x512xf32>
    %5 = arith.addf %3, %4 : vector<8x512xf32>
    %cst_5 = arith.constant 0.000000e+00 : f32
    %6 = vector.broadcast %cst_5 : f32 to vector<8x512xf32>
    %7 = arith.maximumf %5, %6 : vector<8x512xf32>
    %8 = arith.truncf %7 : vector<8x512xf32> to vector<8x512xbf16>
    %c0_6 = arith.constant 0 : index
    %c0_7 = arith.constant 0 : index
    %9 = vector.load %arg4[%c0_6, %c0_7] : memref<512x256xbf16, #tpu.memory_space<vmem>>, vector<512x256xbf16>
    %c0_8 = arith.constant 0 : index
    %c0_9 = arith.constant 0 : index
    %10 = vector.load %arg5[%c0_8, %c0_9] : memref<1x256xf32, #tpu.memory_space<vmem>>, vector<1x256xf32>
    %cst_10 = arith.constant dense<0.000000e+00> : vector<8x256xf32>
    %11 = tpu.matmul %8, %9, %cst_10 {dimension_numbers = #tpu.dot_dimension_numbers<[1], [0], [0], [1], [0, 0, 1, 1], [], []>} : vector<8x512xbf16>, vector<512x256xbf16>, vector<8x256xf32> -> vector<8x256xf32>
    %12 = vector.broadcast %10 : vector<1x256xf32> to vector<8x256xf32>
    %13 = arith.addf %11, %12 : vector<8x256xf32>
    %cst_11 = arith.constant 0.000000e+00 : f32
    %14 = vector.broadcast %cst_11 : f32 to vector<8x256xf32>
    %15 = arith.maximumf %13, %14 : vector<8x256xf32>
    %16 = arith.truncf %15 : vector<8x256xf32> to vector<8x256xbf16>
    %c0_12 = arith.constant 0 : index
    %c0_13 = arith.constant 0 : index
    %17 = vector.load %arg6[%c0_12, %c0_13] : memref<256x128xbf16, #tpu.memory_space<vmem>>, vector<256x128xbf16>
    %c0_14 = arith.constant 0 : index
    %c0_15 = arith.constant 0 : index
    %18 = vector.load %arg7[%c0_14, %c0_15] : memref<1x128xf32, #tpu.memory_space<vmem>>, vector<1x128xf32>
    %cst_16 = arith.constant dense<0.000000e+00> : vector<8x128xf32>
    %19 = tpu.matmul %16, %17, %cst_16 {dimension_numbers = #tpu.dot_dimension_numbers<[1], [0], [0], [1], [0, 0, 1, 1], [], []>} : vector<8x256xbf16>, vector<256x128xbf16>, vector<8x128xf32> -> vector<8x128xf32>
    %20 = vector.broadcast %18 : vector<1x128xf32> to vector<8x128xf32>
    %21 = arith.addf %19, %20 : vector<8x128xf32>
    %cst_17 = arith.constant 0.000000e+00 : f32
    %22 = vector.broadcast %cst_17 : f32 to vector<8x128xf32>
    %23 = arith.maximumf %21, %22 : vector<8x128xf32>
    %24 = arith.truncf %23 : vector<8x128xf32> to vector<8x128xbf16>
    %c0_18 = arith.constant 0 : index
    %c0_19 = arith.constant 0 : index
    %25 = vector.load %arg8[%c0_18, %c0_19] : memref<128x64xbf16, #tpu.memory_space<vmem>>, vector<128x64xbf16>
    %c0_20 = arith.constant 0 : index
    %c0_21 = arith.constant 0 : index
    %26 = vector.load %arg9[%c0_20, %c0_21] : memref<1x64xf32, #tpu.memory_space<vmem>>, vector<1x64xf32>
    %cst_22 = arith.constant dense<0.000000e+00> : vector<8x64xf32>
    %27 = tpu.matmul %24, %25, %cst_22 {dimension_numbers = #tpu.dot_dimension_numbers<[1], [0], [0], [1], [0, 0, 1, 1], [], []>} : vector<8x128xbf16>, vector<128x64xbf16>, vector<8x64xf32> -> vector<8x64xf32>
    %28 = vector.broadcast %26 : vector<1x64xf32> to vector<8x64xf32>
    %29 = arith.addf %27, %28 : vector<8x64xf32>
    %cst_23 = arith.constant 0.000000e+00 : f32
    %30 = vector.broadcast %cst_23 : f32 to vector<8x64xf32>
    %31 = arith.maximumf %29, %30 : vector<8x64xf32>
    %32 = arith.truncf %31 : vector<8x64xf32> to vector<8x64xbf16>
    %c0_24 = arith.constant 0 : index
    %c0_25 = arith.constant 0 : index
    %33 = vector.load %arg10[%c0_24, %c0_25] : memref<64x10xbf16, #tpu.memory_space<vmem>>, vector<64x10xbf16>
    %c0_26 = arith.constant 0 : index
    %c0_27 = arith.constant 0 : index
    %34 = vector.load %arg11[%c0_26, %c0_27] : memref<1x10xf32, #tpu.memory_space<vmem>>, vector<1x10xf32>
    %cst_28 = arith.constant dense<0.000000e+00> : vector<8x10xf32>
    %35 = tpu.matmul %32, %33, %cst_28 {dimension_numbers = #tpu.dot_dimension_numbers<[1], [0], [0], [1], [0, 0, 1, 1], [], []>} : vector<8x64xbf16>, vector<64x10xbf16>, vector<8x10xf32> -> vector<8x10xf32>
    %36 = vector.broadcast %34 : vector<1x10xf32> to vector<8x10xf32>
    %37 = arith.addf %35, %36 : vector<8x10xf32>
    %c0_29 = arith.constant 0 : index
    %c0_30 = arith.constant 0 : index
    %38 = vector.load %arg12[%c0_29, %c0_30] : memref<8x10xf32, #tpu.memory_space<vmem>>, vector<8x10xf32>
    tpu.vector_store %arg12[%c0_29, %c0_30], %37 {strides = array<i32>} : memref<8x10xf32, #tpu.memory_space<vmem>>, vector<8x10xf32>,
    return
  }
  func.func @transform_0(%arg0: i32) -> (i32, i32) {
    %c0_i32 = arith.constant 0 : i32
    %c0_i32_0 = arith.constant 0 : i32
    return %arg0, %c0_i32 : i32, i32
  }
  func.func @transform_1(%arg0: i32) -> (i32, i32) {
    %c0_i32 = arith.constant 0 : i32
    %c0_i32_0 = arith.constant 0 : i32
    %c0_i32_1 = arith.constant 0 : i32
    return %c0_i32, %c0_i32_0 : i32, i32
  }
  func.func @transform_2(%arg0: i32) -> (i32, i32) {
    %c0_i32 = arith.constant 0 : i32
    %c0_i32_0 = arith.constant 0 : i32
    %c0_i32_1 = arith.constant 0 : i32
    return %c0_i32, %c0_i32_0 : i32, i32
  }
  func.func @transform_3(%arg0: i32) -> (i32, i32) {
    %c0_i32 = arith.constant 0 : i32
    %c0_i32_0 = arith.constant 0 : i32
    %c0_i32_1 = arith.constant 0 : i32
    return %c0_i32, %c0_i32_0 : i32, i32
  }
  func.func @transform_4(%arg0: i32) -> (i32, i32) {
    %c0_i32 = arith.constant 0 : i32
    %c0_i32_0 = arith.constant 0 : i32
    %c0_i32_1 = arith.constant 0 : i32
    return %c0_i32, %c0_i32_0 : i32, i32
  }
  func.func @transform_5(%arg0: i32) -> (i32, i32) {
    %c0_i32 = arith.constant 0 : i32
    %c0_i32_0 = arith.constant 0 : i32
    %c0_i32_1 = arith.constant 0 : i32
    return %c0_i32, %c0_i32_0 : i32, i32
  }
  func.func @transform_6(%arg0: i32) -> (i32, i32) {
    %c0_i32 = arith.constant 0 : i32
    %c0_i32_0 = arith.constant 0 : i32
    %c0_i32_1 = arith.constant 0 : i32
    return %c0_i32, %c0_i32_0 : i32, i32
  }
  func.func @transform_7(%arg0: i32) -> (i32, i32) {
    %c0_i32 = arith.constant 0 : i32
    %c0_i32_0 = arith.constant 0 : i32
    %c0_i32_1 = arith.constant 0 : i32
    return %c0_i32, %c0_i32_0 : i32, i32
  }
  func.func @transform_8(%arg0: i32) -> (i32, i32) {
    %c0_i32 = arith.constant 0 : i32
    %c0_i32_0 = arith.constant 0 : i32
    %c0_i32_1 = arith.constant 0 : i32
    return %c0_i32, %c0_i32_0 : i32, i32
  }
  func.func @transform_9(%arg0: i32) -> (i32, i32) {
    %c0_i32 = arith.constant 0 : i32
    %c0_i32_0 = arith.constant 0 : i32
    %c0_i32_1 = arith.constant 0 : i32
    return %c0_i32, %c0_i32_0 : i32, i32
  }
  func.func @transform_10(%arg0: i32) -> (i32, i32) {
    %c0_i32 = arith.constant 0 : i32
    %c0_i32_0 = arith.constant 0 : i32
    %c0_i32_1 = arith.constant 0 : i32
    return %c0_i32, %c0_i32_0 : i32, i32
  }
  func.func @transform_11(%arg0: i32) -> (i32, i32) {
    %c0_i32 = arith.constant 0 : i32
    %c0_i32_0 = arith.constant 0 : i32
    return %arg0, %c0_i32 : i32, i32
  }
}

</mosaic_0001>

<bundles_post_ra>
// kernel: fcnet_forward.1
= control target key start
LH: loop header
LB: loop body
LE: loop exit
PB: predicated region body
PF: predicated region fallthrough
CT: control target
= control target key end

     0   :  { %16 = vsyncpa [#allocation3], 0  ;;  %s4318_s0 = inlined_call_operand.vmem [shape: bf16[8,1024], index: 0, kind: input, shape index: {}]   ;;  %s4319_s1 = inlined_call_operand.hbm [shape: bf16[1024,512], index: 1, kind: input, shape index: {}]   ;;  %s4320_s2 = inlined_call_operand.vmem [shape: f32[1,512], index: 2, kind: input, shape index: {}]   ;;  %s4321_s3 = inlined_call_operand.vmem [shape: bf16[512,256], index: 3, kind: input, shape index: {}]   ;;  %s4322_s4 = inlined_call_operand.vmem [shape: f32[1,256], index: 4, kind: input, shape index: {}]   ;;  %s4323_s5 = inlined_call_operand.vmem [shape: bf16[256,128], index: 5, kind: input, shape index: {}]   ;;  %s4324_s6 = inlined_call_operand.vmem [shape: f32[1,128], index: 6, kind: input, shape index: {}]   ;;  %s4325_s7 = inlined_call_operand.vmem [shape: bf16[128,64], index: 7, kind: input, shape index: {}]   ;;  %s4326_s8 = inlined_call_operand.vmem [shape: f32[1,64], index: 8, kind: input, shape index: {}]   ;;  %s4327_s9 = inlined_call_operand.vmem [shape: bf16[64,10], index: 9, kind: input, shape index: {}]   ;;  %s4328_s10 = inlined_call_operand.vmem [shape: f32[1,10], index: 10, kind: input, shape index: {}]   ;;  %s4329_s11 = inlined_call_operand.hbm [shape: f32[8,10], index: 11, kind: output, shape index: {}]  }
   0x1   :  { %17 = vsyncpa [#allocation4], 0  ;;  %s3884_s17 = smov [#allocation2]   ;;  %s3836_s21 = scalar_lea.hbm %s4319_s1, 32768 }
   0x2   :  { %s25_s18 = sshll.u32 %s3884_s17, 4  ;;  %p3837_p0 = scmp.ne.s32.totalorder %s4319_s1, %s3836_s21  ;;  %s26_s18 = int_to_ptr.vmem [resolvable:$true] %s25_s18 }
   0x3   :  { %p3840_p1 = scmp.lt.u32.totalorder %s3836_s21, %s4319_s1 }
   0x5   :  { %p3842_p2 = pnand %p3840_p1, %p3837_p0 }
   0x7   :  { %3845 = shalt.err (!%p3842_p2)
}
   0x8   :  { %s3846_s26 = scalar_lea.vmem %s26_s18, 32768  ;;  %p3851_p4 = scmp.lt.s32.totalorder %s26_s18, %s26_s18 }
   0x9   :  { %p3847_p3 = scmp.ne.s32.totalorder %s26_s18, %s3846_s26  ;;  %p3852_p5 = scmp.lt.s32.totalorder %s3846_s26, %s3846_s26 }
   0xb   :  { %p3853_p6 = por %p3852_p5, %p3851_p4 }
   0xd   :  { %p3854_p7 = pnand %p3853_p6, %p3847_p3 }
   0xf   :  { %3857 = shalt.err (!%p3854_p7)
}
  0x10   :  { %s3885_s27 = smov 256   ;;  %s3886_s28 = smov 16  }
  0x11   :  { %31 = dma.hbm_to_vmem [thread:$0]  %s4319_s1, 32768, %s26_s18, [#allocation3], %s3885_s27, %s3885_s27, %s3886_s28  }
  0x12   :  { %3880 = dma.done.wait [#allocation3], 32768  }
  0x13   :  { %3881 = vsyncadd [#allocation3], 4294934528  ;;  %v3320_v0 = vld [vmem:[#allocation2 + $0x4] ss:$16 sps:$4 sm:$0xff]   ;;  %v3322_v1 = vld [vmem:[#allocation2 + $0xc] ss:$16 sps:$4 sm:$0xff]  }
  0x14   :  { %1644 = vmatprep.subr.bf16.mxu0 %v3320_v0  ;;  %v3324_v2 = vld [vmem:[#allocation2] ss:$16 sps:$4 sm:$0xff]   ;;  %v3325_v3 = vld [vmem:[#allocation2 + $0x8] ss:$16 sps:$4 sm:$0xff]   ;;  %1808 = vmatprep.subr.bf16.mxu1 %v3322_v1  ;;  %v3326_v4 = vld [vmem:[#allocation2 + $0x24] ss:$16 sps:$4 sm:$0xff]  }
  0x15   :  { %1645 = vmatpush1.bf16.msra.mxu0 %v3324_v2  ;;  %1809 = vmatpush1.bf16.msra.mxu1 %v3325_v3  ;;  %v3328_v5 = vld [vmem:[#allocation2 + $0x2c] ss:$16 sps:$4 sm:$0xff]   ;;  %v3330_v6 = vld [vmem:[#allocation2 + $0x20] ss:$16 sps:$4 sm:$0xff]   ;;  %v3331_v7 = vld [vmem:[#allocation2 + $0x28] ss:$16 sps:$4 sm:$0xff]  }
  0x16   :  { %1646 = vmatprep.subr.bf16.mxu0 %v3326_v4  ;;  %1810 = vmatprep.subr.bf16.mxu1 %v3328_v5  ;;  %v3332_v8 = vld [vmem:[#allocation2 + $0x44] ss:$16 sps:$4 sm:$0xff]   ;;  %v3334_v9 = vld [vmem:[#allocation2 + $0x4c] ss:$16 sps:$4 sm:$0xff]   ;;  %v3336_v10 = vld [vmem:[#allocation2 + $0x40] ss:$16 sps:$4 sm:$0xff]  }
  0x17   :  { %v3337_v11 = vld [vmem:[#allocation2 + $0x48] ss:$16 sps:$4 sm:$0xff]   ;;  %v3338_v12 = vld [vmem:[#allocation2 + $0x64] ss:$16 sps:$4 sm:$0xff]   ;;  %v3340_v13 = vld [vmem:[#allocation2 + $0x6c] ss:$16 sps:$4 sm:$0xff]  }
  0x18   :  { %v3342_v14 = vld [vmem:[#allocation2 + $0x60] ss:$16 sps:$4 sm:$0xff]   ;;  %v3343_v15 = vld [vmem:[#allocation2 + $0x68] ss:$16 sps:$4 sm:$0xff]   ;;  %v3344_v16 = vld [vmem:[#allocation2 + $0x84] ss:$16 sps:$4 sm:$0xff]  }
  0x19   :  { %1647 = vmatpush1.bf16.msra.mxu0 %v3330_v6  ;;  %1811 = vmatpush1.bf16.msra.mxu1 %v3331_v7  ;;  %v3346_v17 = vld [vmem:[#allocation2 + $0x8c] ss:$16 sps:$4 sm:$0xff]   ;;  %v3348_v18 = vld [vmem:[#allocation2 + $0x80] ss:$16 sps:$4 sm:$0xff]   ;;  %v3349_v19 = vld [vmem:[#allocation2 + $0x88] ss:$16 sps:$4 sm:$0xff]  }
  0x1a   :  { %1648 = vmatprep.subr.bf16.mxu0 %v3332_v8  ;;  %1812 = vmatprep.subr.bf16.mxu1 %v3334_v9  ;;  %v3350_v20 = vld [vmem:[#allocation2 + $0xa4] ss:$16 sps:$4 sm:$0xff]   ;;  %v3352_v21 = vld [vmem:[#allocation2 + $0xac] ss:$16 sps:$4 sm:$0xff]   ;;  %v3354_v22 = vld [vmem:[#allocation2 + $0xa0] ss:$16 sps:$4 sm:$0xff]  }
  0x1b   :  { %v3355_v23 = vld [vmem:[#allocation2 + $0xa8] ss:$16 sps:$4 sm:$0xff]   ;;  %v3356_v24 = vld [vmem:[#allocation2 + $0xc4] ss:$16 sps:$4 sm:$0xff]   ;;  %v3358_v25 = vld [vmem:[#allocation2 + $0xcc] ss:$16 sps:$4 sm:$0xff]  }
  0x1c   :  { %v3360_v26 = vld [vmem:[#allocation2 + $0xc0] ss:$16 sps:$4 sm:$0xff]   ;;  %v3361_v27 = vld [vmem:[#allocation2 + $0xc8] ss:$16 sps:$4 sm:$0xff]   ;;  %v3362_v28 = vld [vmem:[#allocation2 + $0xe4] ss:$16 sps:$4 sm:$0xff]  }
  0x1d   :  { %1649 = vmatpush1.bf16.msra.mxu0 %v3336_v10  ;;  %1813 = vmatpush1.bf16.msra.mxu1 %v3337_v11  ;;  %v3364_v29 = vld [vmem:[#allocation2 + $0xec] ss:$16 sps:$4 sm:$0xff]   ;;  %v3366_v30 = vld [vmem:[#allocation2 + $0xe0] ss:$16 sps:$4 sm:$0xff]   ;;  %v3367_v31 = vld [vmem:[#allocation2 + $0xe8] ss:$16 sps:$4 sm:$0xff]  }
  0x1e   :  { %1650 = vmatprep.subr.bf16.mxu0 %v3338_v12  ;;  %1814 = vmatprep.subr.bf16.mxu1 %v3340_v13  ;;  %v3368_v32 = vld [vmem:[#allocation2 + $0x104] ss:$16 sps:$4 sm:$0xff]   ;;  %v3370_v33 = vld [vmem:[#allocation2 + $0x10c] ss:$16 sps:$4 sm:$0xff]   ;;  %v3372_v34 = vld [vmem:[#allocation2 + $0x100] ss:$16 sps:$4 sm:$0xff]  }
  0x1f   :  { %v3373_v35 = vld [vmem:[#allocation2 + $0x108] ss:$16 sps:$4 sm:$0xff]   ;;  %v3374_v36 = vld [vmem:[#allocation2 + $0x124] ss:$16 sps:$4 sm:$0xff]   ;;  %v3376_v37 = vld [vmem:[#allocation2 + $0x12c] ss:$16 sps:$4 sm:$0xff]  }
  0x20   :  { %v3378_v38 = vld [vmem:[#allocation2 + $0x120] ss:$16 sps:$4 sm:$0xff]   ;;  %v3379_v39 = vld [vmem:[#allocation2 + $0x128] ss:$16 sps:$4 sm:$0xff]   ;;  %v3380_v40 = vld [vmem:[#allocation2 + $0x144] ss:$16 sps:$4 sm:$0xff]  }
  0x21   :  { %1651 = vmatpush1.bf16.msra.mxu0 %v3342_v14  ;;  %1815 = vmatpush1.bf16.msra.mxu1 %v3343_v15  ;;  %v3382_v41 = vld [vmem:[#allocation2 + $0x14c] ss:$16 sps:$4 sm:$0xff]   ;;  %v3384_v42 = vld [vmem:[#allocation2 + $0x140] ss:$16 sps:$4 sm:$0xff]   ;;  %v3385_v43 = vld [vmem:[#allocation2 + $0x148] ss:$16 sps:$4 sm:$0xff]  }
  0x22   :  { %1652 = vmatprep.subr.bf16.mxu0 %v3344_v16  ;;  %1816 = vmatprep.subr.bf16.mxu1 %v3346_v17  ;;  %v3386_v44 = vld [vmem:[#allocation2 + $0x164] ss:$16 sps:$4 sm:$0xff]   ;;  %v3388_v45 = vld [vmem:[#allocation2 + $0x16c] ss:$16 sps:$4 sm:$0xff]   ;;  %v3390_v47 = vld [vmem:[#allocation2 + $0x160] ss:$16 sps:$4 sm:$0xff]  }
  0x23   :  { %v54_v46 = vld [vmem:[%s4318_s0] sm:$0xff]  ;;  %v3391_v49 = vld [vmem:[#allocation2 + $0x168] ss:$16 sps:$4 sm:$0xff]   ;;  %v3394_v51 = vld [vmem:[#allocation2 + $0x18c] ss:$16 sps:$4 sm:$0xff]   ;;  %vm3888_vm0 = vmmov 0  }
  0x24   :  { %v2853_v48 = vcombine.high %v54_v46, %v54_v46  ;;  %v3392_v50 = vld [vmem:[#allocation2 + $0x184] ss:$16 sps:$4 sm:$0xff]   ;;  %v3396_v52 = vld [vmem:[#allocation2 + $0x180] ss:$16 sps:$4 sm:$0xff]   ;;  %v3397_v53 = vld [vmem:[#allocation2 + $0x188] ss:$16 sps:$4 sm:$0xff]   ;;  %v2852_v4 = vcombine.low %v54_v46, %v54_v46 }
  0x25   :  { %1653 = vmatpush1.bf16.msra.mxu0 %v3348_v18  ;;  %1817 = vmatpush1.bf16.msra.mxu1 %v3349_v19  ;;  %v3398_v54 = vld [vmem:[#allocation2 + $0x1a4] ss:$16 sps:$4 sm:$0xff]   ;;  %v3400_v55 = vld [vmem:[#allocation2 + $0x1ac] ss:$16 sps:$4 sm:$0xff]   ;;  %v3402_v56 = vld [vmem:[#allocation2 + $0x1a0] ss:$16 sps:$4 sm:$0xff]  }
  0x26   :  { %1654 = vmatprep.subr.bf16.mxu0 %v3350_v20  ;;  %1818 = vmatprep.subr.bf16.mxu1 %v3352_v21  ;;  %v3403_v57 = vld [vmem:[#allocation2 + $0x1a8] ss:$16 sps:$4 sm:$0xff]   ;;  %v3404_v58 = vld [vmem:[#allocation2 + $0x1c4] ss:$16 sps:$4 sm:$0xff]   ;;  %v3406_v59 = vld [vmem:[#allocation2 + $0x1cc] ss:$16 sps:$4 sm:$0xff]  }
  0x27   :  { %1676 = vmatprep.mubr.bf16.mxu0 %v2853_v48  ;;  %1840 = vmatprep.mubr.bf16.mxu1 %v2853_v48  ;;  %v3408_v60 = vld [vmem:[#allocation2 + $0x1c0] ss:$16 sps:$4 sm:$0xff]   ;;  %v3409_v61 = vld [vmem:[#allocation2 + $0x1c8] ss:$16 sps:$4 sm:$0xff]   ;;  %v3410_v62 = vld [vmem:[#allocation2 + $0x1e4] ss:$16 sps:$4 sm:$0xff]  }
  0x28   :  { %v3412_v63 = vld [vmem:[#allocation2 + $0x1ec] ss:$16 sps:$4 sm:$0xff]   ;;  %v3414_v0 = vld [vmem:[#allocation2 + $0x1e0] ss:$16 sps:$4 sm:$0xff]   ;;  %v3415_v1 = vld [vmem:[#allocation2 + $0x1e8] ss:$16 sps:$4 sm:$0xff]  }
  0x29   :  { %1655 = vmatpush1.bf16.msra.mxu0 %v3354_v22  ;;  %1819 = vmatpush1.bf16.msra.mxu1 %v3355_v23  ;;  %v3420_v2 = vld [vmem:[#allocation2 + $0x204] ss:$16 sps:$4 sm:$0xff]   ;;  %v3423_v3 = vld [vmem:[#allocation2 + $0x20c] ss:$16 sps:$4 sm:$0xff]   ;;  %v3418_v5 = vld [vmem:[#allocation2 + $0x200] ss:$16 sps:$4 sm:$0xff]  }
  0x2a   :  { %1656 = vmatprep.subr.bf16.mxu0 %v3356_v24  ;;  %1820 = vmatprep.subr.bf16.mxu1 %v3358_v25  ;;  %v3421_v6 = vld [vmem:[#allocation2 + $0x208] ss:$16 sps:$4 sm:$0xff]   ;;  %v3426_v7 = vld [vmem:[#allocation2 + $0x224] ss:$16 sps:$4 sm:$0xff]   ;;  %v3429_v8 = vld [vmem:[#allocation2 + $0x22c] ss:$16 sps:$4 sm:$0xff]  }
  0x2b   :  { %v3424_v9 = vld [vmem:[#allocation2 + $0x220] ss:$16 sps:$4 sm:$0xff]   ;;  %v3427_v10 = vld [vmem:[#allocation2 + $0x228] ss:$16 sps:$4 sm:$0xff]   ;;  %v3432_v11 = vld [vmem:[#allocation2 + $0x244] ss:$16 sps:$4 sm:$0xff]  }
  0x2c   :  { %v3435_v12 = vld [vmem:[#allocation2 + $0x24c] ss:$16 sps:$4 sm:$0xff]   ;;  %v3430_v13 = vld [vmem:[#allocation2 + $0x240] ss:$16 sps:$4 sm:$0xff]   ;;  %v3433_v14 = vld [vmem:[#allocation2 + $0x248] ss:$16 sps:$4 sm:$0xff]  }
  0x2d   :  { %1657 = vmatpush1.bf16.msra.mxu0 %v3360_v26  ;;  %1821 = vmatpush1.bf16.msra.mxu1 %v3361_v27  ;;  %v3438_v15 = vld [vmem:[#allocation2 + $0x264] ss:$16 sps:$4 sm:$0xff]   ;;  %v3441_v16 = vld [vmem:[#allocation2 + $0x26c] ss:$16 sps:$4 sm:$0xff]   ;;  %v3436_v17 = vld [vmem:[#allocation2 + $0x260] ss:$16 sps:$4 sm:$0xff]  }
  0x2e   :  { %1658 = vmatprep.subr.bf16.mxu0 %v3362_v28  ;;  %1822 = vmatprep.subr.bf16.mxu1 %v3364_v29  ;;  %v3439_v18 = vld [vmem:[#allocation2 + $0x268] ss:$16 sps:$4 sm:$0xff]   ;;  %v3444_v19 = vld [vmem:[#allocation2 + $0x284] ss:$16 sps:$4 sm:$0xff]   ;;  %v3447_v20 = vld [vmem:[#allocation2 + $0x28c] ss:$16 sps:$4 sm:$0xff]  }
  0x2f   :  { %v3442_v21 = vld [vmem:[#allocation2 + $0x280] ss:$16 sps:$4 sm:$0xff]   ;;  %v3445_v22 = vld [vmem:[#allocation2 + $0x288] ss:$16 sps:$4 sm:$0xff]   ;;  %v3450_v23 = vld [vmem:[#allocation2 + $0x2a4] ss:$16 sps:$4 sm:$0xff]  }
  0x30   :  { %v3453_v24 = vld [vmem:[#allocation2 + $0x2ac] ss:$16 sps:$4 sm:$0xff]   ;;  %v3448_v25 = vld [vmem:[#allocation2 + $0x2a0] ss:$16 sps:$4 sm:$0xff]   ;;  %v3451_v26 = vld [vmem:[#allocation2 + $0x2a8] ss:$16 sps:$4 sm:$0xff]  }
  0x31   :  { %1659 = vmatpush1.bf16.msra.mxu0 %v3366_v30  ;;  %1823 = vmatpush1.bf16.msra.mxu1 %v3367_v31  ;;  %v3456_v27 = vld [vmem:[#allocation2 + $0x2c4] ss:$16 sps:$4 sm:$0xff]   ;;  %v3459_v28 = vld [vmem:[#allocation2 + $0x2cc] ss:$16 sps:$4 sm:$0xff]   ;;  %v3454_v31 = vld [vmem:[#allocation2 + $0x2c0] ss:$16 sps:$4 sm:$0xff]  }
  0x32   :  { %1660 = vmatprep.subr.bf16.mxu0 %v3368_v32  ;;  %1824 = vmatprep.subr.bf16.mxu1 %v3370_v33  ;;  %v3968_v29 = vld [vmem:[%s4318_s0 + $0x8] sm:$0xff]  ;;  %v3462_v33 = vld [vmem:[#allocation2 + $0x2e4] ss:$16 sps:$4 sm:$0xff]   ;;  %vm2791_vm1 = vcmask 523264   ;;  %s3889_s1 = smov [#allocation5]   ;;  %vm2835_vm2 = vcmask 80896  }
  0x33   :  { %v2855_v30 = vcombine.high %v3968_v29, %v3968_v29  ;;  %v3457_v32 = vld [vmem:[#allocation2 + $0x2c8] ss:$16 sps:$4 sm:$0xff]   ;;  %v3483_v46 = vld [vmem:[#allocation2 + $0x34c] ss:$16 sps:$4 sm:$0xff]  }
  0x34   :  { %v3481_v48 = vld [vmem:[#allocation2 + $0x348] ss:$16 sps:$4 sm:$0xff]  }
  0x35   :  { %1661 = vmatpush1.bf16.msra.mxu0 %v3372_v34  ;;  %1825 = vmatpush1.bf16.msra.mxu1 %v3373_v35  ;;  %v3465_v34 = vld [vmem:[#allocation2 + $0x2ec] ss:$16 sps:$4 sm:$0xff]   ;;  %v3460_v35 = vld [vmem:[#allocation2 + $0x2e0] ss:$16 sps:$4 sm:$0xff]  }
  0x36   :  { %1662 = vmatprep.subr.bf16.mxu0 %v3374_v36  ;;  %1826 = vmatprep.subr.bf16.mxu1 %v3376_v37  ;;  %v3463_v36 = vld [vmem:[#allocation2 + $0x2e8] ss:$16 sps:$4 sm:$0xff]   ;;  %v3468_v37 = vld [vmem:[#allocation2 + $0x304] ss:$16 sps:$4 sm:$0xff]  }
  0x39   :  { %1663 = vmatpush1.bf16.msra.mxu0 %v3378_v38  ;;  %1827 = vmatpush1.bf16.msra.mxu1 %v3379_v39  ;;  %v3471_v38 = vld [vmem:[#allocation2 + $0x30c] ss:$16 sps:$4 sm:$0xff]   ;;  %v3466_v39 = vld [vmem:[#allocation2 + $0x300] ss:$16 sps:$4 sm:$0xff]  }
  0x3a   :  { %1664 = vmatprep.subr.bf16.mxu0 %v3380_v40  ;;  %1828 = vmatprep.subr.bf16.mxu1 %v3382_v41  ;;  %v3469_v40 = vld [vmem:[#allocation2 + $0x308] ss:$16 sps:$4 sm:$0xff]   ;;  %v3474_v41 = vld [vmem:[#allocation2 + $0x324] ss:$16 sps:$4 sm:$0xff]  }
  0x3d   :  { %1665 = vmatpush1.bf16.msra.mxu0 %v3384_v42  ;;  %1829 = vmatpush1.bf16.msra.mxu1 %v3385_v43  ;;  %v3477_v42 = vld [vmem:[#allocation2 + $0x32c] ss:$16 sps:$4 sm:$0xff]   ;;  %v3472_v43 = vld [vmem:[#allocation2 + $0x320] ss:$16 sps:$4 sm:$0xff]  }
  0x3e   :  { %1666 = vmatprep.subr.bf16.mxu0 %v3386_v44  ;;  %1830 = vmatprep.subr.bf16.mxu1 %v3388_v45  ;;  %v3475_v44 = vld [vmem:[#allocation2 + $0x328] ss:$16 sps:$4 sm:$0xff]   ;;  %v3480_v45 = vld [vmem:[#allocation2 + $0x344] ss:$16 sps:$4 sm:$0xff]  }
  0x41   :  { %1667 = vmatpush1.bf16.msra.mxu0 %v3390_v47  ;;  %1831 = vmatpush1.bf16.msra.mxu1 %v3391_v49  ;;  %v3478_v47 = vld [vmem:[#allocation2 + $0x340] ss:$16 sps:$4 sm:$0xff]   ;;  %v3486_v49 = vld [vmem:[#allocation2 + $0x364] ss:$16 sps:$4 sm:$0xff]  }
  0x42   :  { %1668 = vmatprep.subr.bf16.mxu0 %v3392_v50  ;;  %1832 = vmatprep.subr.bf16.mxu1 %v3394_v51  ;;  %v3489_v50 = vld [vmem:[#allocation2 + $0x36c] ss:$16 sps:$4 sm:$0xff]   ;;  %v3484_v51 = vld [vmem:[#allocation2 + $0x360] ss:$16 sps:$4 sm:$0xff]  }
  0x45   :  { %1669 = vmatpush1.bf16.msra.mxu0 %v3396_v52  ;;  %1833 = vmatpush1.bf16.msra.mxu1 %v3397_v53  ;;  %v3487_v52 = vld [vmem:[#allocation2 + $0x368] ss:$16 sps:$4 sm:$0xff]   ;;  %v3492_v53 = vld [vmem:[#allocation2 + $0x384] ss:$16 sps:$4 sm:$0xff]  }
  0x46   :  { %1670 = vmatprep.subr.bf16.mxu0 %v3398_v54  ;;  %1834 = vmatprep.subr.bf16.mxu1 %v3400_v55  ;;  %v3495_v54 = vld [vmem:[#allocation2 + $0x38c] ss:$16 sps:$4 sm:$0xff]   ;;  %v3490_v55 = vld [vmem:[#allocation2 + $0x380] ss:$16 sps:$4 sm:$0xff]  }
  0x49   :  { %1671 = vmatpush1.bf16.msra.mxu0 %v3402_v56  ;;  %1835 = vmatpush1.bf16.msra.mxu1 %v3403_v57  ;;  %v3493_v56 = vld [vmem:[#allocation2 + $0x388] ss:$16 sps:$4 sm:$0xff]   ;;  %v3498_v57 = vld [vmem:[#allocation2 + $0x3a4] ss:$16 sps:$4 sm:$0xff]  }
  0x4a   :  { %1672 = vmatprep.subr.bf16.mxu0 %v3404_v58  ;;  %1836 = vmatprep.subr.bf16.mxu1 %v3406_v59  ;;  %v3501_v58 = vld [vmem:[#allocation2 + $0x3ac] ss:$16 sps:$4 sm:$0xff]   ;;  %v3496_v59 = vld [vmem:[#allocation2 + $0x3a0] ss:$16 sps:$4 sm:$0xff]  }
  0x4d   :  { %1673 = vmatpush1.bf16.msra.mxu0 %v3408_v60  ;;  %1837 = vmatpush1.bf16.msra.mxu1 %v3409_v61  ;;  %v3499_v60 = vld [vmem:[#allocation2 + $0x3a8] ss:$16 sps:$4 sm:$0xff]   ;;  %v3504_v61 = vld [vmem:[#allocation2 + $0x3c4] ss:$16 sps:$4 sm:$0xff]  }
  0x4e   :  { %1674 = vmatprep.subr.bf16.mxu0 %v3410_v62  ;;  %1838 = vmatprep.subr.bf16.mxu1 %v3412_v63  ;;  %v3507_v62 = vld [vmem:[#allocation2 + $0x3cc] ss:$16 sps:$4 sm:$0xff]   ;;  %v3502_v63 = vld [vmem:[#allocation2 + $0x3c0] ss:$16 sps:$4 sm:$0xff]  }
  0x51   :  { %1675 = vmatpush1.bf16.msra.mxu0 %v3414_v0  ;;  %1839 = vmatpush1.bf16.msra.mxu1 %v3415_v1  ;;  %v3505_v0 = vld [vmem:[#allocation2 + $0x3c8] ss:$16 sps:$4 sm:$0xff]   ;;  %v3510_v1 = vld [vmem:[#allocation2 + $0x3e4] ss:$16 sps:$4 sm:$0xff]  }
  0x52   :  { %1685 = vmatprep.subr.bf16.mxu0 %v3420_v2  ;;  %1849 = vmatprep.subr.bf16.mxu1 %v3423_v3  ;;  %v3513_v2 = vld [vmem:[#allocation2 + $0x3ec] ss:$16 sps:$4 sm:$0xff]   ;;  %v3508_v3 = vld [vmem:[#allocation2 + $0x3e0] ss:$16 sps:$4 sm:$0xff]  }
  0x54   :  { %1677 = vmatmul.mubr.bf16.vlgmr.msra.gmra.mrb[0].mxu0 %v2852_v4  ;;  %1841 = vmatmul.mubr.bf16.vlgmr.msra.gmra.mrb[0].mxu1 %v2852_v4  ;;  %v3511_v4 = vld [vmem:[#allocation2 + $0x3e8] ss:$16 sps:$4 sm:$0xff]  }
  0x55   :  { %1686 = vmatpush1.bf16.msra.mxu0 %v3418_v5  ;;  %1850 = vmatpush1.bf16.msra.mxu1 %v3421_v6  ;;  %v3518_v5 = vld [vmem:[#allocation2 + $0x404] ss:$16 sps:$4 sm:$0xff]   ;;  %v3521_v6 = vld [vmem:[#allocation2 + $0x40c] ss:$16 sps:$4 sm:$0xff]  }
  0x56   :  { %1687 = vmatprep.subr.bf16.mxu0 %v3426_v7  ;;  %1851 = vmatprep.subr.bf16.mxu1 %v3429_v8  ;;  %v2854_v7 = vcombine.low %v3968_v29, %v3968_v29  ;;  %v3516_v8 = vld [vmem:[#allocation2 + $0x400] ss:$16 sps:$4 sm:$0xff]   ;;  %v3551_v29 = vld [vmem:[#allocation2 + $0x4ac] ss:$16 sps:$4 sm:$0xff]  }
  0x57   :  { %1717 = vmatprep.mubr.bf16.mxu0 %v2855_v30  ;;  %1881 = vmatprep.mubr.bf16.mxu1 %v2855_v30  ;;  %v3546_v30 = vld [vmem:[#allocation2 + $0x4a0] ss:$16 sps:$4 sm:$0xff]  }
  0x59   :  { %1688 = vmatpush1.bf16.msra.mxu0 %v3424_v9  ;;  %1852 = vmatpush1.bf16.msra.mxu1 %v3427_v10  ;;  %v3519_v9 = vld [vmem:[#allocation2 + $0x408] ss:$16 sps:$4 sm:$0xff]   ;;  %v3524_v10 = vld [vmem:[#allocation2 + $0x424] ss:$16 sps:$4 sm:$0xff]  }
  0x5a   :  { %1689 = vmatprep.subr.bf16.mxu0 %v3432_v11  ;;  %1853 = vmatprep.subr.bf16.mxu1 %v3435_v12  ;;  %v3977_v11 = vld [vmem:[%s4318_s0 + $0x10] sm:$0xff]  ;;  %v3527_v12 = vld [vmem:[#allocation2 + $0x42c] ss:$16 sps:$4 sm:$0xff]  }
  0x5d   :  { %1690 = vmatpush1.bf16.msra.mxu0 %v3430_v13  ;;  %1854 = vmatpush1.bf16.msra.mxu1 %v3433_v14  ;;  %v2857_v13 = vcombine.high %v3977_v11, %v3977_v11  ;;  %v3522_v14 = vld [vmem:[#allocation2 + $0x420] ss:$16 sps:$4 sm:$0xff]  }
  0x5e   :  { %1691 = vmatprep.subr.bf16.mxu0 %v3438_v15  ;;  %1855 = vmatprep.subr.bf16.mxu1 %v3441_v16  ;;  %v3525_v15 = vld [vmem:[#allocation2 + $0x428] ss:$16 sps:$4 sm:$0xff]   ;;  %v3530_v16 = vld [vmem:[#allocation2 + $0x444] ss:$16 sps:$4 sm:$0xff]  }
  0x61   :  { %1692 = vmatpush1.bf16.msra.mxu0 %v3436_v17  ;;  %1856 = vmatpush1.bf16.msra.mxu1 %v3439_v18  ;;  %v3533_v17 = vld [vmem:[#allocation2 + $0x44c] ss:$16 sps:$4 sm:$0xff]   ;;  %v3528_v18 = vld [vmem:[#allocation2 + $0x440] ss:$16 sps:$4 sm:$0xff]  }
  0x62   :  { %1693 = vmatprep.subr.bf16.mxu0 %v3444_v19  ;;  %1857 = vmatprep.subr.bf16.mxu1 %v3447_v20  ;;  %v3531_v19 = vld [vmem:[#allocation2 + $0x448] ss:$16 sps:$4 sm:$0xff]   ;;  %v3536_v20 = vld [vmem:[#allocation2 + $0x464] ss:$16 sps:$4 sm:$0xff]  }
  0x65   :  { %1694 = vmatpush1.bf16.msra.mxu0 %v3442_v21  ;;  %1858 = vmatpush1.bf16.msra.mxu1 %v3445_v22  ;;  %v3539_v21 = vld [vmem:[#allocation2 + $0x46c] ss:$16 sps:$4 sm:$0xff]   ;;  %v3534_v22 = vld [vmem:[#allocation2 + $0x460] ss:$16 sps:$4 sm:$0xff]  }
  0x66   :  { %1695 = vmatprep.subr.bf16.mxu0 %v3450_v23  ;;  %1859 = vmatprep.subr.bf16.mxu1 %v3453_v24  ;;  %v3537_v23 = vld [vmem:[#allocation2 + $0x468] ss:$16 sps:$4 sm:$0xff]   ;;  %v3542_v24 = vld [vmem:[#allocation2 + $0x484] ss:$16 sps:$4 sm:$0xff]  }
  0x69   :  { %1696 = vmatpush1.bf16.msra.mxu0 %v3448_v25  ;;  %1860 = vmatpush1.bf16.msra.mxu1 %v3451_v26  ;;  %v3545_v25 = vld [vmem:[#allocation2 + $0x48c] ss:$16 sps:$4 sm:$0xff]   ;;  %v3540_v26 = vld [vmem:[#allocation2 + $0x480] ss:$16 sps:$4 sm:$0xff]  }
  0x6a   :  { %1697 = vmatprep.subr.bf16.mxu0 %v3456_v27  ;;  %1861 = vmatprep.subr.bf16.mxu1 %v3459_v28  ;;  %v3543_v27 = vld [vmem:[#allocation2 + $0x488] ss:$16 sps:$4 sm:$0xff]   ;;  %v3548_v28 = vld [vmem:[#allocation2 + $0x4a4] ss:$16 sps:$4 sm:$0xff]  }
  0x6d   :  { %1698 = vmatpush1.bf16.msra.mxu0 %v3454_v31  ;;  %1862 = vmatpush1.bf16.msra.mxu1 %v3457_v32  ;;  %v3549_v31 = vld [vmem:[#allocation2 + $0x4a8] ss:$16 sps:$4 sm:$0xff]   ;;  %v3554_v32 = vld [vmem:[#allocation2 + $0x4c4] ss:$16 sps:$4 sm:$0xff]  }
  0x6e   :  { %1699 = vmatprep.subr.bf16.mxu0 %v3462_v33  ;;  %1863 = vmatprep.subr.bf16.mxu1 %v3465_v34  ;;  %v3557_v33 = vld [vmem:[#allocation2 + $0x4cc] ss:$16 sps:$4 sm:$0xff]   ;;  %v3552_v34 = vld [vmem:[#allocation2 + $0x4c0] ss:$16 sps:$4 sm:$0xff]  }
  0x71   :  { %1700 = vmatpush1.bf16.msra.mxu0 %v3460_v35  ;;  %1864 = vmatpush1.bf16.msra.mxu1 %v3463_v36  ;;  %v3555_v35 = vld [vmem:[#allocation2 + $0x4c8] ss:$16 sps:$4 sm:$0xff]   ;;  %v3560_v36 = vld [vmem:[#allocation2 + $0x4e4] ss:$16 sps:$4 sm:$0xff]  }
  0x72   :  { %1701 = vmatprep.subr.bf16.mxu0 %v3468_v37  ;;  %1865 = vmatprep.subr.bf16.mxu1 %v3471_v38  ;;  %v3563_v37 = vld [vmem:[#allocation2 + $0x4ec] ss:$16 sps:$4 sm:$0xff]   ;;  %v3558_v38 = vld [vmem:[#allocation2 + $0x4e0] ss:$16 sps:$4 sm:$0xff]  }
  0x75   :  { %1702 = vmatpush1.bf16.msra.mxu0 %v3466_v39  ;;  %1866 = vmatpush1.bf16.msra.mxu1 %v3469_v40  ;;  %v3561_v39 = vld [vmem:[#allocation2 + $0x4e8] ss:$16 sps:$4 sm:$0xff]   ;;  %v3566_v40 = vld [vmem:[#allocation2 + $0x504] ss:$16 sps:$4 sm:$0xff]  }
  0x76   :  { %1703 = vmatprep.subr.bf16.mxu0 %v3474_v41  ;;  %1867 = vmatprep.subr.bf16.mxu1 %v3477_v42  ;;  %v3569_v41 = vld [vmem:[#allocation2 + $0x50c] ss:$16 sps:$4 sm:$0xff]   ;;  %v3564_v42 = vld [vmem:[#allocation2 + $0x500] ss:$16 sps:$4 sm:$0xff]  }
  0x79   :  { %1704 = vmatpush1.bf16.msra.mxu0 %v3472_v43  ;;  %1868 = vmatpush1.bf16.msra.mxu1 %v3475_v44  ;;  %v3567_v43 = vld [vmem:[#allocation2 + $0x508] ss:$16 sps:$4 sm:$0xff]   ;;  %v3572_v44 = vld [vmem:[#allocation2 + $0x524] ss:$16 sps:$4 sm:$0xff]  }
  0x7a   :  { %1705 = vmatprep.subr.bf16.mxu0 %v3480_v45  ;;  %1869 = vmatprep.subr.bf16.mxu1 %v3483_v46  ;;  %v3575_v45 = vld [vmem:[#allocation2 + $0x52c] ss:$16 sps:$4 sm:$0xff]   ;;  %v3570_v46 = vld [vmem:[#allocation2 + $0x520] ss:$16 sps:$4 sm:$0xff]  }
  0x7d   :  { %1706 = vmatpush1.bf16.msra.mxu0 %v3478_v47  ;;  %1870 = vmatpush1.bf16.msra.mxu1 %v3481_v48  ;;  %v3573_v47 = vld [vmem:[#allocation2 + $0x528] ss:$16 sps:$4 sm:$0xff]   ;;  %v3578_v48 = vld [vmem:[#allocation2 + $0x544] ss:$16 sps:$4 sm:$0xff]  }
  0x7e   :  { %1707 = vmatprep.subr.bf16.mxu0 %v3486_v49  ;;  %1871 = vmatprep.subr.bf16.mxu1 %v3489_v50  ;;  %v3581_v49 = vld [vmem:[#allocation2 + $0x54c] ss:$16 sps:$4 sm:$0xff]   ;;  %v3576_v50 = vld [vmem:[#allocation2 + $0x540] ss:$16 sps:$4 sm:$0xff]  }
  0x81   :  { %1708 = vmatpush1.bf16.msra.mxu0 %v3484_v51  ;;  %1872 = vmatpush1.bf16.msra.mxu1 %v3487_v52  ;;  %v3579_v51 = vld [vmem:[#allocation2 + $0x548] ss:$16 sps:$4 sm:$0xff]   ;;  %v3584_v52 = vld [vmem:[#allocation2 + $0x564] ss:$16 sps:$4 sm:$0xff]  }
  0x82   :  { %1709 = vmatprep.subr.bf16.mxu0 %v3492_v53  ;;  %1873 = vmatprep.subr.bf16.mxu1 %v3495_v54  ;;  %v3587_v53 = vld [vmem:[#allocation2 + $0x56c] ss:$16 sps:$4 sm:$0xff]   ;;  %v3582_v54 = vld [vmem:[#allocation2 + $0x560] ss:$16 sps:$4 sm:$0xff]  }
  0x85   :  { %1710 = vmatpush1.bf16.msra.mxu0 %v3490_v55  ;;  %1874 = vmatpush1.bf16.msra.mxu1 %v3493_v56  ;;  %v3585_v55 = vld [vmem:[#allocation2 + $0x568] ss:$16 sps:$4 sm:$0xff]   ;;  %v3590_v56 = vld [vmem:[#allocation2 + $0x584] ss:$16 sps:$4 sm:$0xff]  }
  0x86   :  { %1711 = vmatprep.subr.bf16.mxu0 %v3498_v57  ;;  %1875 = vmatprep.subr.bf16.mxu1 %v3501_v58  ;;  %v3593_v57 = vld [vmem:[#allocation2 + $0x58c] ss:$16 sps:$4 sm:$0xff]   ;;  %v3588_v58 = vld [vmem:[#allocation2 + $0x580] ss:$16 sps:$4 sm:$0xff]  }
  0x89   :  { %1712 = vmatpush1.bf16.msra.mxu0 %v3496_v59  ;;  %1876 = vmatpush1.bf16.msra.mxu1 %v3499_v60  ;;  %v3591_v59 = vld [vmem:[#allocation2 + $0x588] ss:$16 sps:$4 sm:$0xff]   ;;  %v3596_v60 = vld [vmem:[#allocation2 + $0x5a4] ss:$16 sps:$4 sm:$0xff]  }
  0x8a   :  { %1713 = vmatprep.subr.bf16.mxu0 %v3504_v61  ;;  %1877 = vmatprep.subr.bf16.mxu1 %v3507_v62  ;;  %v3599_v61 = vld [vmem:[#allocation2 + $0x5ac] ss:$16 sps:$4 sm:$0xff]   ;;  %v3594_v62 = vld [vmem:[#allocation2 + $0x5a0] ss:$16 sps:$4 sm:$0xff]  }
  0x8d   :  { %1714 = vmatpush1.bf16.msra.mxu0 %v3502_v63  ;;  %1878 = vmatpush1.bf16.msra.mxu1 %v3505_v0  ;;  %v3597_v63 = vld [vmem:[#allocation2 + $0x5a8] ss:$16 sps:$4 sm:$0xff]   ;;  %v3602_v0 = vld [vmem:[#allocation2 + $0x5c4] ss:$16 sps:$4 sm:$0xff]  }
  0x8e   :  { %1715 = vmatprep.subr.bf16.mxu0 %v3510_v1  ;;  %1879 = vmatprep.subr.bf16.mxu1 %v3513_v2  ;;  %v3605_v1 = vld [vmem:[#allocation2 + $0x5cc] ss:$16 sps:$4 sm:$0xff]   ;;  %v3600_v2 = vld [vmem:[#allocation2 + $0x5c0] ss:$16 sps:$4 sm:$0xff]  }
  0x91   :  { %1716 = vmatpush1.bf16.msra.mxu0 %v3508_v3  ;;  %1880 = vmatpush1.bf16.msra.mxu1 %v3511_v4  ;;  %v3603_v3 = vld [vmem:[#allocation2 + $0x5c8] ss:$16 sps:$4 sm:$0xff]   ;;  %v3608_v4 = vld [vmem:[#allocation2 + $0x5e4] ss:$16 sps:$4 sm:$0xff]  }
  0x92   :  { %1726 = vmatprep.subr.bf16.mxu0 %v3518_v5  ;;  %1890 = vmatprep.subr.bf16.mxu1 %v3521_v6  ;;  %v3611_v5 = vld [vmem:[#allocation2 + $0x5ec] ss:$16 sps:$4 sm:$0xff]   ;;  %v3606_v6 = vld [vmem:[#allocation2 + $0x5e0] ss:$16 sps:$4 sm:$0xff]  }
  0x94   :  { %1718 = vmatmul.mubr.bf16.vlgmr.msra.gmra.mrb[0].mxu0 %v2854_v7  ;;  %1882 = vmatmul.mubr.bf16.vlgmr.msra.gmra.mrb[0].mxu1 %v2854_v7  ;;  %v3609_v7 = vld [vmem:[#allocation2 + $0x5e8] ss:$16 sps:$4 sm:$0xff]  }
  0x95   :  { %1727 = vmatpush1.bf16.msra.mxu0 %v3516_v8  ;;  %1891 = vmatpush1.bf16.msra.mxu1 %v3519_v9  ;;  %v3616_v8 = vld [vmem:[#allocation2 + $0x604] ss:$16 sps:$4 sm:$0xff]   ;;  %v3619_v9 = vld [vmem:[#allocation2 + $0x60c] ss:$16 sps:$4 sm:$0xff]  }
  0x96   :  { %1728 = vmatprep.subr.bf16.mxu0 %v3524_v10  ;;  %1892 = vmatprep.subr.bf16.mxu1 %v3527_v12  ;;  %v3614_v10 = vld [vmem:[#allocation2 + $0x600] ss:$16 sps:$4 sm:$0xff]   ;;  %v3617_v12 = vld [vmem:[#allocation2 + $0x608] ss:$16 sps:$4 sm:$0xff]  }
  0x97   :  { %1758 = vmatprep.mubr.bf16.mxu0 %v2857_v13  ;;  %1922 = vmatprep.mubr.bf16.mxu1 %v2857_v13  ;;  %v3984_v13 = vld [vmem:[%s4318_s0 + $0x18] sm:$0xff] }
  0x99   :  { %1729 = vmatpush1.bf16.msra.mxu0 %v3522_v14  ;;  %1893 = vmatpush1.bf16.msra.mxu1 %v3525_v15  ;;  %v2856_v14 = vcombine.low %v3977_v11, %v3977_v11  ;;  %v3622_v15 = vld [vmem:[#allocation2 + $0x624] ss:$16 sps:$4 sm:$0xff]   ;;  %v3626_v11 = vld [vmem:[#allocation2 + $0x640] ss:$16 sps:$4 sm:$0xff]  }
  0x9a   :  { %1730 = vmatprep.subr.bf16.mxu0 %v3530_v16  ;;  %1894 = vmatprep.subr.bf16.mxu1 %v3533_v17  ;;  %v3625_v16 = vld [vmem:[#allocation2 + $0x62c] ss:$16 sps:$4 sm:$0xff]   ;;  %v3620_v17 = vld [vmem:[#allocation2 + $0x620] ss:$16 sps:$4 sm:$0xff]  }
  0x9d   :  { %1731 = vmatpush1.bf16.msra.mxu0 %v3528_v18  ;;  %1895 = vmatpush1.bf16.msra.mxu1 %v3531_v19  ;;  %v3623_v18 = vld [vmem:[#allocation2 + $0x628] ss:$16 sps:$4 sm:$0xff]   ;;  %v2859_v19 = vcombine.high %v3984_v13, %v3984_v13 }
  0x9e   :  { %1732 = vmatprep.subr.bf16.mxu0 %v3536_v20  ;;  %1896 = vmatprep.subr.bf16.mxu1 %v3539_v21  ;;  %v3628_v20 = vld [vmem:[#allocation2 + $0x644] ss:$16 sps:$4 sm:$0xff]   ;;  %v3631_v21 = vld [vmem:[#allocation2 + $0x64c] ss:$16 sps:$4 sm:$0xff]  }
  0xa1   :  { %1733 = vmatpush1.bf16.msra.mxu0 %v3534_v22  ;;  %1897 = vmatpush1.bf16.msra.mxu1 %v3537_v23  ;;  %v3629_v22 = vld [vmem:[#allocation2 + $0x648] ss:$16 sps:$4 sm:$0xff]   ;;  %v3634_v23 = vld [vmem:[#allocation2 + $0x664] ss:$16 sps:$4 sm:$0xff]  }
  0xa2   :  { %1734 = vmatprep.subr.bf16.mxu0 %v3542_v24  ;;  %1898 = vmatprep.subr.bf16.mxu1 %v3545_v25  ;;  %v3637_v24 = vld [vmem:[#allocation2 + $0x66c] ss:$16 sps:$4 sm:$0xff]   ;;  %v3632_v25 = vld [vmem:[#allocation2 + $0x660] ss:$16 sps:$4 sm:$0xff]  }
  0xa5   :  { %1735 = vmatpush1.bf16.msra.mxu0 %v3540_v26  ;;  %1899 = vmatpush1.bf16.msra.mxu1 %v3543_v27  ;;  %v3635_v26 = vld [vmem:[#allocation2 + $0x668] ss:$16 sps:$4 sm:$0xff]   ;;  %v3640_v27 = vld [vmem:[#allocation2 + $0x684] ss:$16 sps:$4 sm:$0xff]  }
  0xa6   :  { %1736 = vmatprep.subr.bf16.mxu0 %v3548_v28  ;;  %1900 = vmatprep.subr.bf16.mxu1 %v3551_v29  ;;  %v3643_v28 = vld [vmem:[#allocation2 + $0x68c] ss:$16 sps:$4 sm:$0xff]   ;;  %v3638_v29 = vld [vmem:[#allocation2 + $0x680] ss:$16 sps:$4 sm:$0xff]  }
  0xa9   :  { %1737 = vmatpush1.bf16.msra.mxu0 %v3546_v30  ;;  %1901 = vmatpush1.bf16.msra.mxu1 %v3549_v31  ;;  %v3641_v30 = vld [vmem:[#allocation2 + $0x688] ss:$16 sps:$4 sm:$0xff]   ;;  %v3646_v31 = vld [vmem:[#allocation2 + $0x6a4] ss:$16 sps:$4 sm:$0xff]  }
  0xaa   :  { %1738 = vmatprep.subr.bf16.mxu0 %v3554_v32  ;;  %1902 = vmatprep.subr.bf16.mxu1 %v3557_v33  ;;  %v3649_v32 = vld [vmem:[#allocation2 + $0x6ac] ss:$16 sps:$4 sm:$0xff]   ;;  %v3644_v33 = vld [vmem:[#allocation2 + $0x6a0] ss:$16 sps:$4 sm:$0xff]  }
  0xad   :  { %1739 = vmatpush1.bf16.msra.mxu0 %v3552_v34  ;;  %1903 = vmatpush1.bf16.msra.mxu1 %v3555_v35  ;;  %v3647_v34 = vld [vmem:[#allocation2 + $0x6a8] ss:$16 sps:$4 sm:$0xff]   ;;  %v3652_v35 = vld [vmem:[#allocation2 + $0x6c4] ss:$16 sps:$4 sm:$0xff]  }
  0xae   :  { %1740 = vmatprep.subr.bf16.mxu0 %v3560_v36  ;;  %1904 = vmatprep.subr.bf16.mxu1 %v3563_v37  ;;  %v3655_v36 = vld [vmem:[#allocation2 + $0x6cc] ss:$16 sps:$4 sm:$0xff]   ;;  %v3650_v37 = vld [vmem:[#allocation2 + $0x6c0] ss:$16 sps:$4 sm:$0xff]  }
  0xb1   :  { %1741 = vmatpush1.bf16.msra.mxu0 %v3558_v38  ;;  %1905 = vmatpush1.bf16.msra.mxu1 %v3561_v39  ;;  %v3653_v38 = vld [vmem:[#allocation2 + $0x6c8] ss:$16 sps:$4 sm:$0xff]   ;;  %v3658_v39 = vld [vmem:[#allocation2 + $0x6e4] ss:$16 sps:$4 sm:$0xff]  }
  0xb2   :  { %1742 = vmatprep.subr.bf16.mxu0 %v3566_v40  ;;  %1906 = vmatprep.subr.bf16.mxu1 %v3569_v41  ;;  %v3661_v40 = vld [vmem:[#allocation2 + $0x6ec] ss:$16 sps:$4 sm:$0xff]   ;;  %v3656_v41 = vld [vmem:[#allocation2 + $0x6e0] ss:$16 sps:$4 sm:$0xff]  }
  0xb5   :  { %1743 = vmatpush1.bf16.msra.mxu0 %v3564_v42  ;;  %1907 = vmatpush1.bf16.msra.mxu1 %v3567_v43  ;;  %v3659_v42 = vld [vmem:[#allocation2 + $0x6e8] ss:$16 sps:$4 sm:$0xff]   ;;  %v3664_v43 = vld [vmem:[#allocation2 + $0x704] ss:$16 sps:$4 sm:$0xff]  }
  0xb6   :  { %1744 = vmatprep.subr.bf16.mxu0 %v3572_v44  ;;  %1908 = vmatprep.subr.bf16.mxu1 %v3575_v45  ;;  %v3667_v44 = vld [vmem:[#allocation2 + $0x70c] ss:$16 sps:$4 sm:$0xff]   ;;  %v3662_v45 = vld [vmem:[#allocation2 + $0x700] ss:$16 sps:$4 sm:$0xff]  }
  0xb9   :  { %1745 = vmatpush1.bf16.msra.mxu0 %v3570_v46  ;;  %1909 = vmatpush1.bf16.msra.mxu1 %v3573_v47  ;;  %v3665_v46 = vld [vmem:[#allocation2 + $0x708] ss:$16 sps:$4 sm:$0xff]   ;;  %v3670_v47 = vld [vmem:[#allocation2 + $0x724] ss:$16 sps:$4 sm:$0xff]  }
  0xba   :  { %1746 = vmatprep.subr.bf16.mxu0 %v3578_v48  ;;  %1910 = vmatprep.subr.bf16.mxu1 %v3581_v49  ;;  %v3673_v48 = vld [vmem:[#allocation2 + $0x72c] ss:$16 sps:$4 sm:$0xff]   ;;  %v3668_v49 = vld [vmem:[#allocation2 + $0x720] ss:$16 sps:$4 sm:$0xff]  }
  0xbd   :  { %1747 = vmatpush1.bf16.msra.mxu0 %v3576_v50  ;;  %1911 = vmatpush1.bf16.msra.mxu1 %v3579_v51  ;;  %v3671_v50 = vld [vmem:[#allocation2 + $0x728] ss:$16 sps:$4 sm:$0xff]   ;;  %v3676_v51 = vld [vmem:[#allocation2 + $0x744] ss:$16 sps:$4 sm:$0xff]  }
  0xbe   :  { %1748 = vmatprep.subr.bf16.mxu0 %v3584_v52  ;;  %1912 = vmatprep.subr.bf16.mxu1 %v3587_v53  ;;  %v3679_v52 = vld [vmem:[#allocation2 + $0x74c] ss:$16 sps:$4 sm:$0xff]   ;;  %v3674_v53 = vld [vmem:[#allocation2 + $0x740] ss:$16 sps:$4 sm:$0xff]  }
  0xc1   :  { %1749 = vmatpush1.bf16.msra.mxu0 %v3582_v54  ;;  %1913 = vmatpush1.bf16.msra.mxu1 %v3585_v55  ;;  %v3677_v54 = vld [vmem:[#allocation2 + $0x748] ss:$16 sps:$4 sm:$0xff]   ;;  %v3682_v55 = vld [vmem:[#allocation2 + $0x764] ss:$16 sps:$4 sm:$0xff]  }
  0xc2   :  { %1750 = vmatprep.subr.bf16.mxu0 %v3590_v56  ;;  %1914 = vmatprep.subr.bf16.mxu1 %v3593_v57  ;;  %v3685_v56 = vld [vmem:[#allocation2 + $0x76c] ss:$16 sps:$4 sm:$0xff]   ;;  %v3680_v57 = vld [vmem:[#allocation2 + $0x760] ss:$16 sps:$4 sm:$0xff]  }
  0xc5   :  { %1751 = vmatpush1.bf16.msra.mxu0 %v3588_v58  ;;  %1915 = vmatpush1.bf16.msra.mxu1 %v3591_v59  ;;  %v3683_v58 = vld [vmem:[#allocation2 + $0x768] ss:$16 sps:$4 sm:$0xff]   ;;  %v3688_v59 = vld [vmem:[#allocation2 + $0x784] ss:$16 sps:$4 sm:$0xff]  }
  0xc6   :  { %1752 = vmatprep.subr.bf16.mxu0 %v3596_v60  ;;  %1916 = vmatprep.subr.bf16.mxu1 %v3599_v61  ;;  %v3691_v60 = vld [vmem:[#allocation2 + $0x78c] ss:$16 sps:$4 sm:$0xff]   ;;  %v3686_v61 = vld [vmem:[#allocation2 + $0x780] ss:$16 sps:$4 sm:$0xff]  }
  0xc9   :  { %1753 = vmatpush1.bf16.msra.mxu0 %v3594_v62  ;;  %1917 = vmatpush1.bf16.msra.mxu1 %v3597_v63  ;;  %v3689_v62 = vld [vmem:[#allocation2 + $0x788] ss:$16 sps:$4 sm:$0xff]   ;;  %v3694_v63 = vld [vmem:[#allocation2 + $0x7a4] ss:$16 sps:$4 sm:$0xff]  }
  0xca   :  { %1754 = vmatprep.subr.bf16.mxu0 %v3602_v0  ;;  %1918 = vmatprep.subr.bf16.mxu1 %v3605_v1  ;;  %v3697_v0 = vld [vmem:[#allocation2 + $0x7ac] ss:$16 sps:$4 sm:$0xff]   ;;  %v3692_v1 = vld [vmem:[#allocation2 + $0x7a0] ss:$16 sps:$4 sm:$0xff]  }
  0xcd   :  { %1755 = vmatpush1.bf16.msra.mxu0 %v3600_v2  ;;  %1919 = vmatpush1.bf16.msra.mxu1 %v3603_v3  ;;  %v3695_v2 = vld [vmem:[#allocation2 + $0x7a8] ss:$16 sps:$4 sm:$0xff]   ;;  %v3700_v3 = vld [vmem:[#allocation2 + $0x7c4] ss:$16 sps:$4 sm:$0xff]  }
  0xce   :  { %1756 = vmatprep.subr.bf16.mxu0 %v3608_v4  ;;  %1920 = vmatprep.subr.bf16.mxu1 %v3611_v5  ;;  %v3703_v4 = vld [vmem:[#allocation2 + $0x7cc] ss:$16 sps:$4 sm:$0xff]   ;;  %v3698_v5 = vld [vmem:[#allocation2 + $0x7c0] ss:$16 sps:$4 sm:$0xff]  }
  0xd1   :  { %1757 = vmatpush1.bf16.msra.mxu0 %v3606_v6  ;;  %1921 = vmatpush1.bf16.msra.mxu1 %v3609_v7  ;;  %v3701_v6 = vld [vmem:[#allocation2 + $0x7c8] ss:$16 sps:$4 sm:$0xff]   ;;  %v3706_v7 = vld [vmem:[#allocation2 + $0x7e4] ss:$16 sps:$4 sm:$0xff]  }
  0xd2   :  { %1767 = vmatprep.subr.bf16.mxu0 %v3616_v8  ;;  %1931 = vmatprep.subr.bf16.mxu1 %v3619_v9  ;;  %v3709_v8 = vld [vmem:[#allocation2 + $0x7ec] ss:$16 sps:$4 sm:$0xff]   ;;  %v3704_v9 = vld [vmem:[#allocation2 + $0x7e0] ss:$16 sps:$4 sm:$0xff]  }
  0xd4   :  { %1759 = vmatmul.mubr.bf16.vlgmr.msra.gmra.mrb[0].mxu0 %v2856_v14  ;;  %1923 = vmatmul.mubr.bf16.vlgmr.msra.gmra.mrb[0].mxu1 %v2856_v14  ;;  %v2858_v14 = vcombine.low %v3984_v13, %v3984_v13  ;;  %v3720_v13 = vld [vmem:[%s4321_s3 + $0x24] ss:$8 sps:$4 sm:$0xff]  }
  0xd5   :  { %1768 = vmatpush1.bf16.msra.mxu0 %v3614_v10  ;;  %1932 = vmatpush1.bf16.msra.mxu1 %v3617_v12  ;;  %v3707_v10 = vld [vmem:[#allocation2 + $0x7e8] ss:$16 sps:$4 sm:$0xff]   ;;  %v3714_v12 = vld [vmem:[%s4321_s3 + $0x4] ss:$8 sps:$4 sm:$0xff]  }
  0xd6   :  { %1769 = vmatprep.subr.bf16.mxu0 %v3622_v15  ;;  %1933 = vmatprep.subr.bf16.mxu1 %v3625_v16  ;;  %v3712_v15 = vld [vmem:[%s4321_s3] ss:$8 sps:$4 sm:$0xff]   ;;  %v3717_v16 = vld [vmem:[%s4321_s3 + $0x14] ss:$8 sps:$4 sm:$0xff]  }
  0xd7   :  { %1799 = vmatprep.mubr.bf16.mxu0 %v2859_v19  ;;  %1963 = vmatprep.mubr.bf16.mxu1 %v2859_v19  ;;  %v3723_v19 = vld [vmem:[%s4321_s3 + $0x34] ss:$8 sps:$4 sm:$0xff]  }
  0xd9   :  { %1770 = vmatpush1.bf16.msra.mxu0 %v3620_v17  ;;  %1934 = vmatpush1.bf16.msra.mxu1 %v3623_v18  ;;  %v3715_v17 = vld [vmem:[%s4321_s3 + $0x10] ss:$8 sps:$4 sm:$0xff]   ;;  %v3718_v18 = vld [vmem:[%s4321_s3 + $0x20] ss:$8 sps:$4 sm:$0xff]  }
  0xda   :  { %1771 = vmatprep.subr.bf16.mxu0 %v3628_v20  ;;  %1935 = vmatprep.subr.bf16.mxu1 %v3631_v21  ;;  %v3721_v20 = vld [vmem:[%s4321_s3 + $0x30] ss:$8 sps:$4 sm:$0xff]   ;;  %v3726_v21 = vld [vmem:[%s4321_s3 + $0x44] ss:$8 sps:$4 sm:$0xff]  }
  0xdd   :  { %1772 = vmatpush1.bf16.msra.mxu0 %v3626_v11  ;;  %1936 = vmatpush1.bf16.msra.mxu1 %v3629_v22  ;;  %v3724_v11 = vld [vmem:[%s4321_s3 + $0x40] ss:$8 sps:$4 sm:$0xff]   ;;  %v3729_v22 = vld [vmem:[%s4321_s3 + $0x54] ss:$8 sps:$4 sm:$0xff]  }
  0xde   :  { %1773 = vmatprep.subr.bf16.mxu0 %v3634_v23  ;;  %1937 = vmatprep.subr.bf16.mxu1 %v3637_v24  ;;  %v3727_v23 = vld [vmem:[%s4321_s3 + $0x50] ss:$8 sps:$4 sm:$0xff]   ;;  %v3732_v24 = vld [vmem:[%s4321_s3 + $0x64] ss:$8 sps:$4 sm:$0xff]  }
  0xe1   :  { %1774 = vmatpush1.bf16.msra.mxu0 %v3632_v25  ;;  %1938 = vmatpush1.bf16.msra.mxu1 %v3635_v26  ;;  %v3730_v25 = vld [vmem:[%s4321_s3 + $0x60] ss:$8 sps:$4 sm:$0xff]   ;;  %v3735_v26 = vld [vmem:[%s4321_s3 + $0x74] ss:$8 sps:$4 sm:$0xff]  }
  0xe2   :  { %1775 = vmatprep.subr.bf16.mxu0 %v3640_v27  ;;  %1939 = vmatprep.subr.bf16.mxu1 %v3643_v28  ;;  %v3733_v27 = vld [vmem:[%s4321_s3 + $0x70] ss:$8 sps:$4 sm:$0xff]   ;;  %v3738_v28 = vld [vmem:[%s4321_s3 + $0x84] ss:$8 sps:$4 sm:$0xff]  }
  0xe5   :  { %1776 = vmatpush1.bf16.msra.mxu0 %v3638_v29  ;;  %1940 = vmatpush1.bf16.msra.mxu1 %v3641_v30  ;;  %v3736_v29 = vld [vmem:[%s4321_s3 + $0x80] ss:$8 sps:$4 sm:$0xff]   ;;  %v3741_v30 = vld [vmem:[%s4321_s3 + $0x94] ss:$8 sps:$4 sm:$0xff]  }
  0xe6   :  { %1777 = vmatprep.subr.bf16.mxu0 %v3646_v31  ;;  %1941 = vmatprep.subr.bf16.mxu1 %v3649_v32  ;;  %v3739_v31 = vld [vmem:[%s4321_s3 + $0x90] ss:$8 sps:$4 sm:$0xff]   ;;  %v3744_v32 = vld [vmem:[%s4321_s3 + $0xa4] ss:$8 sps:$4 sm:$0xff]  }
  0xe9   :  { %1778 = vmatpush1.bf16.msra.mxu0 %v3644_v33  ;;  %1942 = vmatpush1.bf16.msra.mxu1 %v3647_v34  ;;  %v3742_v33 = vld [vmem:[%s4321_s3 + $0xa0] ss:$8 sps:$4 sm:$0xff]   ;;  %v3747_v34 = vld [vmem:[%s4321_s3 + $0xb4] ss:$8 sps:$4 sm:$0xff]  }
  0xea   :  { %1779 = vmatprep.subr.bf16.mxu0 %v3652_v35  ;;  %1943 = vmatprep.subr.bf16.mxu1 %v3655_v36  ;;  %v3745_v35 = vld [vmem:[%s4321_s3 + $0xb0] ss:$8 sps:$4 sm:$0xff]   ;;  %v3750_v36 = vld [vmem:[%s4321_s3 + $0xc4] ss:$8 sps:$4 sm:$0xff]  }
  0xed   :  { %1780 = vmatpush1.bf16.msra.mxu0 %v3650_v37  ;;  %1944 = vmatpush1.bf16.msra.mxu1 %v3653_v38  ;;  %v3748_v37 = vld [vmem:[%s4321_s3 + $0xc0] ss:$8 sps:$4 sm:$0xff]   ;;  %v3753_v38 = vld [vmem:[%s4321_s3 + $0xd4] ss:$8 sps:$4 sm:$0xff]  }
  0xee   :  { %1781 = vmatprep.subr.bf16.mxu0 %v3658_v39  ;;  %1945 = vmatprep.subr.bf16.mxu1 %v3661_v40  ;;  %v3751_v39 = vld [vmem:[%s4321_s3 + $0xd0] ss:$8 sps:$4 sm:$0xff]   ;;  %v3756_v40 = vld [vmem:[%s4321_s3 + $0xe4] ss:$8 sps:$4 sm:$0xff]  }
  0xf1   :  { %1782 = vmatpush1.bf16.msra.mxu0 %v3656_v41  ;;  %1946 = vmatpush1.bf16.msra.mxu1 %v3659_v42  ;;  %v3754_v41 = vld [vmem:[%s4321_s3 + $0xe0] ss:$8 sps:$4 sm:$0xff]   ;;  %v3759_v42 = vld [vmem:[%s4321_s3 + $0xf4] ss:$8 sps:$4 sm:$0xff]  }
  0xf2   :  { %1783 = vmatprep.subr.bf16.mxu0 %v3664_v43  ;;  %1947 = vmatprep.subr.bf16.mxu1 %v3667_v44  ;;  %v3757_v43 = vld [vmem:[%s4321_s3 + $0xf0] ss:$8 sps:$4 sm:$0xff]   ;;  %v3762_v44 = vld [vmem:[%s4321_s3 + $0x104] ss:$8 sps:$4 sm:$0xff]  }
  0xf5   :  { %1784 = vmatpush1.bf16.msra.mxu0 %v3662_v45  ;;  %1948 = vmatpush1.bf16.msra.mxu1 %v3665_v46  ;;  %v3808_v45 = vld [vmem:[%s4323_s5 + $0x40] sm:$0xff]  }
  0xf6   :  { %1785 = vmatprep.subr.bf16.mxu0 %v3670_v47  ;;  %1949 = vmatprep.subr.bf16.mxu1 %v3673_v48  ;;  %v3809_v46 = vld [vmem:[%s4323_s5] sm:$0xff]   ;;  %v3810_v47 = vld [vmem:[%s4323_s5 + $0x48] sm:$0xff]  }
  0xf7   :  { %v3811_v48 = vld [vmem:[%s4323_s5 + $0x8] sm:$0xff]  }
  0xf9   :  { %1786 = vmatpush1.bf16.msra.mxu0 %v3668_v49  ;;  %1950 = vmatpush1.bf16.msra.mxu1 %v3671_v50  ;;  %v3812_v49 = vld [vmem:[%s4323_s5 + $0x50] sm:$0xff]  }
  0xfa   :  { %1787 = vmatprep.subr.bf16.mxu0 %v3676_v51  ;;  %1951 = vmatprep.subr.bf16.mxu1 %v3679_v52  ;;  %v3813_v50 = vld [vmem:[%s4323_s5 + $0x10] sm:$0xff]   ;;  %v3814_v51 = vld [vmem:[%s4323_s5 + $0x58] sm:$0xff]  }
  0xfb   :  { %v3815_v52 = vld [vmem:[%s4323_s5 + $0x18] sm:$0xff]  }
  0xfd   :  { %1788 = vmatpush1.bf16.msra.mxu0 %v3674_v53  ;;  %1952 = vmatpush1.bf16.msra.mxu1 %v3677_v54  ;;  %v3816_v53 = vld [vmem:[%s4323_s5 + $0x60] sm:$0xff]  }
  0xfe   :  { %1789 = vmatprep.subr.bf16.mxu0 %v3682_v55  ;;  %1953 = vmatprep.subr.bf16.mxu1 %v3685_v56  ;;  %v3817_v54 = vld [vmem:[%s4323_s5 + $0x20] sm:$0xff]   ;;  %v3818_v55 = vld [vmem:[%s4323_s5 + $0x68] sm:$0xff]  }
  0xff   :  { %v3819_v56 = vld [vmem:[%s4323_s5 + $0x28] sm:$0xff]  }
 0x101   :  { %1790 = vmatpush1.bf16.msra.mxu0 %v3680_v57  ;;  %1954 = vmatpush1.bf16.msra.mxu1 %v3683_v58  ;;  %v316_v57 = vlaneseq }
 0x102   :  { %1791 = vmatprep.subr.bf16.mxu0 %v3688_v59  ;;  %1955 = vmatprep.subr.bf16.mxu1 %v3691_v60  ;;  %v4133_v60 = vld [vmem:[%s4320_s2] sm:$0xf] }
 0x103   :  { %v4127_v58 = vshrl.u32 %v316_v57, 7  ;;  %v3822_v57 = vld [vmem:[%s4323_s5 + $0x78] sm:$0xff]  }
 0x105   :  { %1792 = vmatpush1.bf16.msra.mxu0 %v3686_v61  ;;  %1956 = vmatpush1.bf16.msra.mxu1 %v3689_v62  ;;  %v318_v59 = vsub.s32 0, %v4127_v58  ;;  %v322_v61 = vsub.s32 1, %v4127_v58  ;;  %v330_v62 = vsub.s32 3, %v4127_v58 }
 0x106   :  { %1793 = vmatprep.subr.bf16.mxu0 %v3694_v63  ;;  %1957 = vmatprep.subr.bf16.mxu1 %v3697_v0 }
 0x107   :  { %v319_v63 = vrot.slane %v4133_v60, %v318_v59  ;;  %v323_v0 = vrot.slane %v4133_v60, %v322_v61 }
 0x109   :  { %1794 = vmatpush1.bf16.msra.mxu0 %v3692_v1  ;;  %1958 = vmatpush1.bf16.msra.mxu1 %v3695_v2  ;;  %v331_v1 = vrot.slane %v4133_v60, %v330_v62  ;;  %v3887_v62 = vmov 0.0  }
 0x10a   :  { %1795 = vmatprep.subr.bf16.mxu0 %v3700_v3  ;;  %1959 = vmatprep.subr.bf16.mxu1 %v3703_v4 }
 0x10d   :  { %1796 = vmatpush1.bf16.msra.mxu0 %v3698_v5  ;;  %1960 = vmatpush1.bf16.msra.mxu1 %v3701_v6 }
 0x10e   :  { %1797 = vmatprep.subr.bf16.mxu0 %v3706_v7  ;;  %1961 = vmatprep.subr.bf16.mxu1 %v3709_v8 }
 0x111   :  { %1798 = vmatpush1.bf16.msra.mxu0 %v3704_v9  ;;  %1962 = vmatpush1.bf16.msra.mxu1 %v3707_v10 }
 0x112   :  { %2376 = vmatprep.subr.bf16.mxu0 %v3714_v12  ;;  %3212 = vmatprep.subr.bf16.mxu1 %v3808_v45  ;;  %v3801_v45 = vld [vmem:[%s4321_s3 + $0x1d4] ss:$8 sps:$4 sm:$0xff]  }
 0x114   :  { %1800 = vmatmul.mubr.bf16.vlgmr.msra.gmra.mrb[0].mxu0 %v2858_v14  ;;  %1964 = vmatmul.mubr.bf16.vlgmr.msra.gmra.mrb[0].mxu1 %v2858_v14 }
 0x115   :  { %2377 = vmatpush1.bf16.msra.mxu0 %v3712_v15  ;;  %3213 = vmatpush3.bf16.msra.mxu1 %v3809_v46  ;;  %v3799_v46 = vld [vmem:[%s4321_s3 + $0x1d0] ss:$8 sps:$4 sm:$0xff]  }
 0x116   :  { %2378 = vmatprep.subr.bf16.mxu0 %v3717_v16  ;;  %3214 = vmatprep.subr.bf16.mxu1 %v3810_v47 }
 0x119   :  { %2379 = vmatpush1.bf16.msra.mxu0 %v3715_v17  ;;  %3215 = vmatpush3.bf16.msra.mxu1 %v3811_v48  ;;  %v3804_v48 = vld [vmem:[%s4321_s3 + $0x1e4] ss:$8 sps:$4 sm:$0xff]  }
 0x11a   :  { %2380 = vmatprep.subr.bf16.mxu0 %v3720_v13  ;;  %3216 = vmatprep.subr.bf16.mxu1 %v3812_v49  ;;  %v3802_v49 = vld [vmem:[%s4321_s3 + $0x1e0] ss:$8 sps:$4 sm:$0xff]  }
 0x11d   :  { %2381 = vmatpush1.bf16.msra.mxu0 %v3718_v18  ;;  %3217 = vmatpush3.bf16.msra.mxu1 %v3813_v50  ;;  %v3760_v18 = vld [vmem:[%s4321_s3 + $0x100] ss:$8 sps:$4 sm:$0xff]  }
 0x11e   :  { %2382 = vmatprep.subr.bf16.mxu0 %v3723_v19  ;;  %3218 = vmatprep.subr.bf16.mxu1 %v3814_v51  ;;  %v3807_v51 = vld [vmem:[%s4321_s3 + $0x1f4] ss:$8 sps:$4 sm:$0xff]  }
 0x121   :  { %2383 = vmatpush1.bf16.msra.mxu0 %v3721_v20  ;;  %3219 = vmatpush3.bf16.msra.mxu1 %v3815_v52  ;;  %v3765_v20 = vld [vmem:[%s4321_s3 + $0x114] ss:$8 sps:$4 sm:$0xff]   ;;  %v3805_v52 = vld [vmem:[%s4321_s3 + $0x1f0] ss:$8 sps:$4 sm:$0xff]  }
 0x122   :  { %2384 = vmatprep.subr.bf16.mxu0 %v3726_v21  ;;  %3220 = vmatprep.subr.bf16.mxu1 %v3816_v53 }
 0x125   :  { %2385 = vmatpush1.bf16.msra.mxu0 %v3724_v11  ;;  %3221 = vmatpush3.bf16.msra.mxu1 %v3817_v54  ;;  %v3763_v11 = vld [vmem:[%s4321_s3 + $0x110] ss:$8 sps:$4 sm:$0xff]  }
 0x126   :  { %2386 = vmatprep.subr.bf16.mxu0 %v3729_v22  ;;  %3222 = vmatprep.subr.bf16.mxu1 %v3818_v55  ;;  %v3768_v22 = vld [vmem:[%s4321_s3 + $0x124] ss:$8 sps:$4 sm:$0xff]   ;;  %v3820_v55 = vld [vmem:[%s4323_s5 + $0x70] sm:$0xff]  }
 0x129   :  { %2387 = vmatpush1.bf16.msra.mxu0 %v3727_v23  ;;  %3223 = vmatpush3.bf16.msra.mxu1 %v3819_v56  ;;  %v3766_v23 = vld [vmem:[%s4321_s3 + $0x120] ss:$8 sps:$4 sm:$0xff]   ;;  %v3821_v56 = vld [vmem:[%s4323_s5 + $0x30] sm:$0xff]  }
 0x12a   :  { %2388 = vmatprep.subr.bf16.mxu0 %v3732_v24  ;;  %v3771_v24 = vld [vmem:[%s4321_s3 + $0x134] ss:$8 sps:$4 sm:$0xff]   ;;  %3224 = vmatprep.subr.bf16.mxu1 %v3820_v55 }
 0x12d   :  { %2389 = vmatpush1.bf16.msra.mxu0 %v3730_v25  ;;  %v3769_v25 = vld [vmem:[%s4321_s3 + $0x130] ss:$8 sps:$4 sm:$0xff]   ;;  %3225 = vmatpush3.bf16.msra.mxu1 %v3821_v56 }
 0x12e   :  { %2390 = vmatprep.subr.bf16.mxu0 %v3735_v26  ;;  %v3774_v26 = vld [vmem:[%s4321_s3 + $0x144] ss:$8 sps:$4 sm:$0xff]   ;;  %3226 = vmatprep.subr.bf16.mxu1 %v3822_v57 }
 0x131   :  { %2391 = vmatpush1.bf16.msra.mxu0 %v3733_v27  ;;  %v3772_v27 = vld [vmem:[%s4321_s3 + $0x140] ss:$8 sps:$4 sm:$0xff]  }
 0x132   :  { %2392 = vmatprep.subr.bf16.mxu0 %v3738_v28  ;;  %v3777_v28 = vld [vmem:[%s4321_s3 + $0x154] ss:$8 sps:$4 sm:$0xff]  }
 0x135   :  { %2393 = vmatpush1.bf16.msra.mxu0 %v3736_v29  ;;  %v3775_v29 = vld [vmem:[%s4321_s3 + $0x150] ss:$8 sps:$4 sm:$0xff]  }
 0x136   :  { %2394 = vmatprep.subr.bf16.mxu0 %v3741_v30  ;;  %v3780_v30 = vld [vmem:[%s4321_s3 + $0x164] ss:$8 sps:$4 sm:$0xff]  }
 0x139   :  { %2395 = vmatpush1.bf16.msra.mxu0 %v3739_v31  ;;  %v3778_v31 = vld [vmem:[%s4321_s3 + $0x160] ss:$8 sps:$4 sm:$0xff]  }
 0x13a   :  { %2396 = vmatprep.subr.bf16.mxu0 %v3744_v32  ;;  %v3783_v32 = vld [vmem:[%s4321_s3 + $0x174] ss:$8 sps:$4 sm:$0xff]  }
 0x13d   :  { %2397 = vmatpush1.bf16.msra.mxu0 %v3742_v33  ;;  %v3781_v33 = vld [vmem:[%s4321_s3 + $0x170] ss:$8 sps:$4 sm:$0xff]  }
 0x13e   :  { %2398 = vmatprep.subr.bf16.mxu0 %v3747_v34  ;;  %v3786_v34 = vld [vmem:[%s4321_s3 + $0x184] ss:$8 sps:$4 sm:$0xff]  }
 0x141   :  { %2399 = vmatpush1.bf16.msra.mxu0 %v3745_v35  ;;  %v3784_v35 = vld [vmem:[%s4321_s3 + $0x180] ss:$8 sps:$4 sm:$0xff]  }
 0x142   :  { %2400 = vmatprep.subr.bf16.mxu0 %v3750_v36  ;;  %v3789_v36 = vld [vmem:[%s4321_s3 + $0x194] ss:$8 sps:$4 sm:$0xff]  }
 0x145   :  { %2401 = vmatpush1.bf16.msra.mxu0 %v3748_v37  ;;  %v3787_v37 = vld [vmem:[%s4321_s3 + $0x190] ss:$8 sps:$4 sm:$0xff]  }
 0x146   :  { %2402 = vmatprep.subr.bf16.mxu0 %v3753_v38  ;;  %v3792_v38 = vld [vmem:[%s4321_s3 + $0x1a4] ss:$8 sps:$4 sm:$0xff]  }
 0x149   :  { %2403 = vmatpush1.bf16.msra.mxu0 %v3751_v39  ;;  %v3790_v39 = vld [vmem:[%s4321_s3 + $0x1a0] ss:$8 sps:$4 sm:$0xff]  }
 0x14a   :  { %2404 = vmatprep.subr.bf16.mxu0 %v3756_v40  ;;  %v3795_v40 = vld [vmem:[%s4321_s3 + $0x1b4] ss:$8 sps:$4 sm:$0xff]  }
 0x14d   :  { %2405 = vmatpush1.bf16.msra.mxu0 %v3754_v41  ;;  %v3793_v41 = vld [vmem:[%s4321_s3 + $0x1b0] ss:$8 sps:$4 sm:$0xff]  }
 0x14e   :  { %2406 = vmatprep.subr.bf16.mxu0 %v3759_v42  ;;  %v3798_v42 = vld [vmem:[%s4321_s3 + $0x1c4] ss:$8 sps:$4 sm:$0xff]  }
 0x151   :  { %2407 = vmatpush1.bf16.msra.mxu0 %v3757_v43  ;;  %v3796_v43 = vld [vmem:[%s4321_s3 + $0x1c0] ss:$8 sps:$4 sm:$0xff]  }
 0x152   :  { %2417 = vmatprep.subr.bf16.mxu0 %v3762_v44  ;;  %v326_v44 = vsub.s32 2, %v4127_v58  ;;  %v3825_v58 = vld [vmem:[%s4325_s7 + $0x8] sm:$0xff]  }
 0x154   :  { %v327_v47 = vrot.slane %v4133_v60, %v326_v44  ;;  %v3823_v60 = vld [vmem:[%s4323_s5 + $0x38] sm:$0xff]  }
 0x155   :  { %3227 = vmatpush3.bf16.msra.mxu1 %v3823_v60 }
 0x156   :  { %3248 = vmatprep.subr.bf16.mxu1 %v3887_v62 }
 0x1e7   :  { %v1801_v2 = vpop.f32.mrb[0].mxu0  ;;  %v4144_v3 = vpop.f32.mrb[0].mxu1 }
 0x1e8   :  { %v3280_v4 = vadd.f32 %v1801_v2, %v319_v63  ;;  %v1803_v5 = vpop.f32.mrb[1].mxu0  ;;  %v1967_v6 = vpop.f32.mrb[1].mxu1  ;;  %v3282_v50 = vadd.f32 %v4144_v3, %v327_v47  ;;  %v2044_v63 = vld [vmem:[%s4322_s4] sm:$0x3] }
 0x1e9   :  { %v3281_v7 = vadd.f32 %v1803_v5, %v323_v0  ;;  %v3283_v8 = vadd.f32 %v1967_v6, %v331_v1  ;;  %v1805_v9 = vpop.f32.mrb[2].mxu0  ;;  %v1969_v10 = vpop.f32.mrb[2].mxu1  ;;  %v2049_v0 = vrot.slane %v2044_v63, %v318_v59  ;;  %v2053_v1 = vrot.slane %v2044_v63, %v322_v61  ;;  %v3826_v59 = vld [vmem:[%s4325_s7 + $0x10] sm:$0xff]   ;;  %v3827_v61 = vld [vmem:[%s4325_s7 + $0x18] sm:$0xff]  }
 0x1ea   :  { %v1972_v12 = vmax.f32 %v3280_v4, 0.0  ;;  %v1806_v14 = vpop.f32.mrb[3].mxu0  ;;  %v1970_v15 = vpop.f32.mrb[3].mxu1  ;;  %v1974_v53 = vmax.f32 %v3282_v50, 0.0 }
 0x1eb   :  { %v1973_v16 = vmax.f32 %v3281_v7, 0.0  ;;  %v1975_v17 = vmax.f32 %v3283_v8, 0.0  ;;  %v3828_v15 = vld [vmem:[%s4325_s7 + $0x20] sm:$0xff]  }
 0x1ec   :  { %v1976_v19 = vpack.c.bf16 %v1972_v12, %v1972_v12  ;;  %v1978_v54 = vpack.c.bf16 %v1974_v53, %v1974_v53  ;;  %v3824_v12 = vld [vmem:[%s4325_s7] sm:$0xff]  }
 0x1ed   :  { %v1977_v13 = vpack.c.bf16 %v1973_v16, %v1973_v16  ;;  %v1979_v21 = vpack.c.bf16 %v1975_v17, %v1975_v17  ;;  %v3829_v16 = vld [vmem:[%s4325_s7 + $0x28] sm:$0xff]   ;;  %v3830_v17 = vld [vmem:[%s4325_s7 + $0x30] sm:$0xff]  }
 0x1ef   :  { %2408 = vmatprep.mubr.bf16.mxu0 %v1977_v13  ;;  %v3831_v13 = vld [vmem:[%s4325_s7 + $0x38] sm:$0xff]  }
 0x1f0   :  { %2409 = vmatmul.mubr.bf16.vlgmr.msra.gmra.mrb[4].mxu0 %v1976_v19  ;;  %v3180_v19 = vld [vmem:[%s4324_s6] ss:$0 sm:$0xff] }
 0x1f1   :  { %2418 = vmatpush1.bf16.msra.mxu0 %v3760_v18  ;;  %2449 = vmatprep.mubr.bf16.mxu0 %v1979_v21 }
 0x1f2   :  { %2419 = vmatprep.subr.bf16.mxu0 %v3765_v20 }
 0x1f5   :  { %2420 = vmatpush1.bf16.msra.mxu0 %v3763_v11 }
 0x1f6   :  { %2421 = vmatprep.subr.bf16.mxu0 %v3768_v22 }
 0x1f9   :  { %2422 = vmatpush1.bf16.msra.mxu0 %v3766_v23 }
 0x1fa   :  { %2423 = vmatprep.subr.bf16.mxu0 %v3771_v24 }
 0x1fd   :  { %2424 = vmatpush1.bf16.msra.mxu0 %v3769_v25  ;;  %v3832_v25 = vld [vmem:[%s4327_s9] sm:$0xff]  }
 0x1fe   :  { %2425 = vmatprep.subr.bf16.mxu0 %v3774_v26 }
 0x201   :  { %2426 = vmatpush1.bf16.msra.mxu0 %v3772_v27  ;;  %v3833_v27 = vld [vmem:[%s4327_s9 + $0x8] sm:$0xff]  }
 0x202   :  { %2427 = vmatprep.subr.bf16.mxu0 %v3777_v28  ;;  %v3834_v28 = vld [vmem:[%s4327_s9 + $0x10] sm:$0xff]  }
 0x205   :  { %2428 = vmatpush1.bf16.msra.mxu0 %v3775_v29  ;;  %v3835_v29 = vld [vmem:[%s4327_s9 + $0x18] sm:$0xff]   ;;  %s2843_s9 = sshll.u32 %s3889_s1, 4  ;;  %s2844_s9 = int_to_ptr.vmem [resolvable:$true] %s2843_s9 }
 0x206   :  { %2429 = vmatprep.subr.bf16.mxu0 %v3780_v30  ;;  %v3197_v30 = vld [vmem:[%s4326_s8] ss:$0 sm:$0xff]  ;;  %s3858_s8 = scalar_lea.vmem %s2844_s9, 128  ;;  %p3863_p9 = scmp.lt.s32.totalorder %s2844_s9, %s2844_s9 }
 0x207   :  { %p3859_p8 = scmp.ne.s32.totalorder %s2844_s9, %s3858_s8  ;;  %p3864_p10 = scmp.lt.s32.totalorder %s3858_s8, %s3858_s8 }
 0x209   :  { %2430 = vmatpush1.bf16.msra.mxu0 %v3778_v31  ;;  %p3865_p11 = por %p3864_p10, %p3863_p9 }
 0x20a   :  { %2431 = vmatprep.subr.bf16.mxu0 %v3783_v32 }
 0x20b   :  { %p3866_p12 = pnand %p3865_p11, %p3859_p8 }
 0x20d   :  { %2432 = vmatpush1.bf16.msra.mxu0 %v3781_v33 }
 0x20e   :  { %2433 = vmatprep.subr.bf16.mxu0 %v3786_v34 }
 0x211   :  { %2434 = vmatpush1.bf16.msra.mxu0 %v3784_v35 }
 0x212   :  { %2435 = vmatprep.subr.bf16.mxu0 %v3789_v36 }
 0x215   :  { %2436 = vmatpush1.bf16.msra.mxu0 %v3787_v37 }
 0x216   :  { %2437 = vmatprep.subr.bf16.mxu0 %v3792_v38  ;;  %v3206_v38 = vld [vmem:[%s4328_s10] ss:$0 sm:$0xff] }
 0x219   :  { %2438 = vmatpush1.bf16.msra.mxu0 %v3790_v39 }
 0x21a   :  { %2439 = vmatprep.subr.bf16.mxu0 %v3795_v40 }
 0x21d   :  { %2440 = vmatpush1.bf16.msra.mxu0 %v3793_v41 }
 0x21e   :  { %2441 = vmatprep.subr.bf16.mxu0 %v3798_v42 }
 0x221   :  { %2442 = vmatpush1.bf16.msra.mxu0 %v3796_v43 }
 0x222   :  { %2443 = vmatprep.subr.bf16.mxu0 %v3801_v45 }
 0x225   :  { %2444 = vmatpush1.bf16.msra.mxu0 %v3799_v46 }
 0x226   :  { %2445 = vmatprep.subr.bf16.mxu0 %v3804_v48 }
 0x229   :  { %2446 = vmatpush1.bf16.msra.mxu0 %v3802_v49 }
 0x22a   :  { %2447 = vmatprep.subr.bf16.mxu0 %v3807_v51 }
 0x22d   :  { %2448 = vmatpush1.bf16.msra.mxu0 %v3805_v52 }
 0x230   :  { %2450 = vmatmul.mubr.bf16.vlgmr.msra.gmra.mrb[4].mxu0 %v1978_v54 }
 0x303   :  { %v2451_v2 = vpop.f32.mrb[4].mxu0 }
 0x304   :  { %v3284_v3 = vadd.f32 %v2451_v2, %v2049_v0  ;;  %v2453_v4 = vpop.f32.mrb[5].mxu0 }
 0x305   :  { %v3285_v5 = vadd.f32 %v2453_v4, %v2053_v1  ;;  %v2455_v6 = vpop.f32.mrb[6].mxu0 }
 0x306   :  { %v2458_v7 = vmax.f32 %v3284_v3, 0.0  ;;  %v2456_v8 = vpop.f32.mrb[7].mxu0 }
 0x307   :  { %v2459_v9 = vmax.f32 %v3285_v5, 0.0 }
 0x308   :  { %v2460_v14 = vpack.c.bf16 %v2458_v7, %v2458_v7 }
 0x309   :  { %v2461_v10 = vpack.c.bf16 %v2459_v9, %v2459_v9 }
 0x30b   :  { %2629 = vmatprep.mubr.bf16.mxu1 %v2461_v10 }
 0x30c   :  { %2630 = vmatmul.mubr.bf16.vlgmr.msra.gmra.mrb[4].mxu1 %v2460_v14 }
 0x30d   :  { %3249 = vmatpush3.bf16.msra.mxu1 %v3824_v12  ;;  %3264 = vmatprep.mubr.msk.bf16.mxu1 %vm3888_vm0, %v3887_v62 }
 0x30e   :  { %3250 = vmatprep.subr.bf16.mxu1 %v3887_v62 }
 0x311   :  { %3251 = vmatpush3.bf16.msra.mxu1 %v3825_v58 }
 0x312   :  { %3252 = vmatprep.subr.bf16.mxu1 %v3887_v62 }
 0x315   :  { %3253 = vmatpush3.bf16.msra.mxu1 %v3826_v59 }
 0x316   :  { %3254 = vmatprep.subr.bf16.mxu1 %v3887_v62 }
 0x319   :  { %3255 = vmatpush3.bf16.msra.mxu1 %v3827_v61 }
 0x31a   :  { %3256 = vmatprep.subr.bf16.mxu1 %v3887_v62 }
 0x31d   :  { %3257 = vmatpush3.bf16.msra.mxu1 %v3828_v15 }
 0x31e   :  { %3258 = vmatprep.subr.bf16.mxu1 %v3887_v62 }
 0x321   :  { %3259 = vmatpush3.bf16.msra.mxu1 %v3829_v16 }
 0x322   :  { %3260 = vmatprep.subr.bf16.mxu1 %v3887_v62 }
 0x325   :  { %3261 = vmatpush3.bf16.msra.mxu1 %v3830_v17 }
 0x326   :  { %3262 = vmatprep.subr.bf16.mxu1 %v3887_v62 }
 0x329   :  { %3263 = vmatpush3.bf16.msra.mxu1 %v3831_v13 }
 0x32a   :  { %3268 = vmatprep.subr.bf16.mxu1 %v3887_v62 }
 0x3df   :  { %v3228_v18 = vpop.f32.mrb[4].mxu1 }
 0x3e0   :  { %v3229_v20 = vpop.f32.mrb[5].mxu1 }
 0x3e1   :  { %v3230_v21 = vadd.f32 %v3229_v20, %v3228_v18  ;;  %v3231_v11 = vpop.f32.mrb[6].mxu1 }
 0x3e2   :  { %v3232_v22 = vpop.f32.mrb[7].mxu1 }
 0x3e3   :  { %v2632_v23 = vadd.f32 %v3230_v21, %v3180_v19 }
 0x3e5   :  { %v2637_v24 = vmax.f32 %v2632_v23, 0.0 }
 0x3e7   :  { %v2638_v26 = vpack.c.bf16 %v2637_v24, %v2637_v24 }
 0x3e9   :  { %3265 = vmatmul.mubr.bf16.vlgmr.msra.gmra.mrb[8].mxu1 %v2638_v26 }
 0x3ea   :  { %3269 = vmatpush3.bf16.msra.mxu1 %v3832_v25  ;;  %3276 = vmatprep.mubr.msk.bf16.mxu1 %vm3888_vm0, %v3887_v62 }
 0x3eb   :  { %3270 = vmatprep.subr.bf16.mxu1 %v3887_v62 }
 0x3ee   :  { %3271 = vmatpush3.bf16.msra.mxu1 %v3833_v27 }
 0x3ef   :  { %3272 = vmatprep.subr.bf16.mxu1 %v3887_v62 }
 0x3f2   :  { %3273 = vmatpush3.bf16.msra.mxu1 %v3834_v28 }
 0x3f3   :  { %3274 = vmatprep.subr.bf16.mxu1 %v3887_v62 }
 0x3f6   :  { %3275 = vmatpush3.bf16.msra.mxu1 %v3835_v29 }
 0x4bc   :  { %v2744_v31 = vpop.f32.mrb[8].mxu1 }
 0x4bd   :  { %v2745_v32 = vadd.f32 %v3197_v30, %v2744_v31  ;;  %v3266_v33 = vpop.f32.mrb[9].mxu1 }
 0x4be   :  { %v2747_v34 = vpop.f32.mrb[10].mxu1 }
 0x4bf   :  { %v2750_v35 = vmax.f32 %v2745_v32, 0.0  ;;  %v3267_v36 = vpop.f32.mrb[11].mxu1 }
 0x4c1   :  { %v2751_v37 = vpack.c.bf16 %v2750_v35, %v2750_v35 }
 0x4c3   :  { %3277 = vmatmul.mubr.msk.bf16.vlgmr.msra.gmra.mrb[12].mxu1 %vm2791_vm1, %v2751_v37 }
 0x596   :  { %v2829_v39 = vpop.f32.mrb[12].mxu1 }
 0x597   :  { %v2830_v40 = vadd.f32 %v3206_v38, %v2829_v39  ;;  %v3278_v41 = vpop.f32.mrb[13].mxu1 }
 0x598   :  { %v2832_v42 = vpop.f32.mrb[14].mxu1 }
 0x599   :  { %v3279_v43 = vpop.f32.mrb[15].mxu1  ;;  %2836 = vst.msk [vmem:[#allocation5] sm:$0xff] %vm2835_vm2, %v2830_v40 }
 0x59a   :  { %3869 = shalt.err (!%p3866_p12)
}
 0x59b   :  { %s3870_s10 = scalar_lea.hbm %s4329_s11, 128 }
 0x59c   :  { %p3871_p13 = scmp.ne.s32.totalorder %s4329_s11, %s3870_s10  ;;  %p3874_p0 = scmp.lt.u32.totalorder %s3870_s10, %s4329_s11 }
 0x59e   :  { %p3876_p1 = pnand %p3874_p0, %p3871_p13 }
 0x5a0   :  { %3879 = shalt.err (!%p3876_p1)
}
 0x5a1   :  { %2846 = dma.vmem_to_hbm [thread:$0]  %s2844_s9, 128, %s4329_s11, [#allocation4]  }
 0x5a2   :  { %3882 = dma.done.wait [#allocation4], 128  }
 0x5a3   :  { %3883 = vsyncadd [#allocation4], 4294967168 }
 0x5a4   :  { %2850 = vsyncpa [#allocation3], 1 }
 0x5a5   :  { %2851 = vsyncpa [#allocation4], 1 }

</bundles_post_ra>
